<compile_context>
chip_gen: v6e
topology: v6e:2x2x1
jax: 0.10.0
libtpu: 0.0.40
codegen_flags: <defaults>
</compile_context>

<pallas_src>
import functools

import jax
import jax.numpy as jnp
from jax.experimental import pallas as pl
from jax.experimental.pallas import tpu as pltpu


def _rnn_s_kernel(x_ref, w_ih_ref, w_hh_ref, bias_ref, w_fc_ref, b_fc_ref,
                  out_ref, *, k: int):
    """One grid step processes TB batch elements.

    x_ref   : (TB, L, H)  f32 activations (cast to matmul dtype in-kernel)
    w_ih_ref: (H, H)      input->hidden, pre-transposed (x @ w_ih)
    w_hh_ref: (H, H)      hidden->hidden, pre-transposed (h @ w_hh)
    bias_ref: (1, H)      b_ih + b_hh, f32 (folded on host)
    w_fc_ref: (H, H)      final Linear, pre-transposed
    b_fc_ref: (1, H)      n_win * b_fc, f32 (folded on host)
    out_ref : (TB, H)     f32
    """
    TB, L, H = x_ref.shape
    n_win = L - k
    flat = TB * L

    w_ih = w_ih_ref[...]
    w_hh = w_hh_ref[...]
    mm_dtype = w_ih.dtype

    # In-kernel cast of the f32 activations to the matmul dtype: a VPU op
    # hidden under the MXU, instead of a separate XLA convert pass over HBM.
    x_flat = x_ref[...].reshape(flat, H).astype(mm_dtype)

    # Shared input projection for EVERY sequence position; the folded RNN bias
    # is added once here (it is row-constant, so the roll below leaves the
    # bias contribution unchanged) -> no per-step broadcast adds.
    u = (jnp.dot(x_flat, w_ih, preferred_element_type=jnp.float32)
         + bias_ref[...])                                   # (flat, H) f32

    # RNN recurrence over the k window steps, flattened over (batch, pos).
    # Step 0 is peeled: h0 == 0 exactly, so there is no h @ w_hh term.
    # TODO(synk): use_state=True (h0 != 0 + state_layer) and bidirectional=True
    # are not implemented (module defaults are False).
    h = jnp.tanh(u)                                         # (flat, H) f32
    for idx in range(1, k):                                 # k is tiny -> unrolled
        # Window t, step idx consumes x[t + idx]: shift u up by idx rows via
        # the XLU rotate (no concatenate copy).  Rows that wrap across a batch
        # boundary only feed window positions >= L-k, dropped below.
        u_shift = pltpu.roll(u, shift=flat - idx, axis=0)
        h = jnp.tanh(u_shift
                     + jnp.dot(h.astype(mm_dtype), w_hh,
                               preferred_element_type=jnp.float32))

    # ELU(alpha=1).  exp(h)-1 is used instead of expm1 for guaranteed Mosaic
    # lowering; for the negative branch it differs from expm1 by < ~1.2e-7
    # absolute, far below the network's f32 noise floor.
    elu = jnp.where(h > 0, h, jnp.exp(h) - 1.0)

    # Sum over the n_win valid windows of each batch element.  A static slice
    # drops the junk positions (>= L-k) -- no full-slab int32 iota mask.
    s = jnp.sum(elu.reshape(TB, L, H)[:, :n_win, :], axis=1)  # (TB, H) f32

    # Final Linear commuted with the window sum:
    #   sum_w (elu_w @ W_fc + b_fc) == (sum_w elu_w) @ W_fc + n_win * b_fc
    # (n_win * b_fc is pre-folded into b_fc_ref on the host).
    y = (jnp.dot(s.astype(mm_dtype), w_fc_ref[...],
                 preferred_element_type=jnp.float32)
         + b_fc_ref[...])
    out_ref[...] = y.astype(out_ref.dtype)


def prepare_params(params, *, seq_len: int, k: int = 2,
                   matmul_dtype=jnp.bfloat16):
    """One-time host-side folding / casting of the module constants.

    Keep this OUT of the per-call path: weights are constants, so the bf16
    casts and the bias folds (b_ih + b_hh, n_win * b_fc) should not be
    re-issued on every forward.
    """
    w_ih, w_hh, b_ih, b_hh, w_fc, b_fc = params
    H = w_ih.shape[-1]
    n_win = seq_len - k
    bias = (jnp.asarray(b_ih) + jnp.asarray(b_hh)).reshape(1, H).astype(jnp.float32)
    b_fc_scaled = (float(n_win) * jnp.asarray(b_fc)).reshape(1, H).astype(jnp.float32)
    return (jnp.asarray(w_ih).astype(matmul_dtype),
            jnp.asarray(w_hh).astype(matmul_dtype),
            bias,
            jnp.asarray(w_fc).astype(matmul_dtype),
            b_fc_scaled)


def rnn_network_type_s(x, prepared_params, *, k: int = 2, block_b: int | None = None):
    """x: (B, L, H) float32.  Returns (B, H) float32."""
    B, L, H = x.shape
    assert L > k, "sequence length must exceed k"
    w_ih_m, w_hh_m, bias, w_fc_m, b_fc_scaled = prepared_params

    # Batch tile: a single fat grid step by default.  The whole kernel is
    # ~17 MFLOP, so per-step pipeline overhead dominates any split; only pick
    # block_b for large B, sized so tb*L is a few thousand rows and the f32
    # intermediates stay inside VMEM (v7x scoped default is 32 MiB -- half of
    # v5e/v6e -- so re-derive the tile when porting to v7x).
    tb = B if block_b is None else min(block_b, B)
    assert B % tb == 0, "choose block_b dividing B (or pad the batch)"
    grid_b = B // tb

    # VMEM guard: ~4 live (tb*L, H) f32 slabs + double-buffered x block +
    # resident weights.  Keep well under the v7x scoped default.
    mm_bytes = jnp.dtype(w_ih_m.dtype).itemsize
    live_bytes = (4 * tb * L * H * 4 + 2 * tb * L * H * 4 + 3 * H * H * mm_bytes)
    assert live_bytes < 24 * 1024 * 1024, (
        "batch tile too large for VMEM; lower block_b or K-tile the weights")

    # Advisory cost estimate so XLA schedules surrounding ops around this
    # tiny, latency-bound kernel instead of serializing.
    flops = 2 * B * L * H * H * k + 2 * B * H * H
    transcendentals = (k + 1) * B * L * H
    bytes_accessed = (B * L * H * 4 + 3 * H * H * mm_bytes + 2 * H * 4 + B * H * 4)

    kernel = functools.partial(_rnn_s_kernel, k=k)
    return pl.pallas_call(
        kernel,
        out_shape=jax.ShapeDtypeStruct((B, H), jnp.float32),
        grid_spec=pltpu.PrefetchScalarGridSpec(
            num_scalar_prefetch=0,
            grid=(grid_b,),
            in_specs=[
                pl.BlockSpec((tb, L, H), lambda b: (b, 0, 0)),   # x (f32)
                pl.BlockSpec((H, H), lambda b: (0, 0)),          # w_ih
                pl.BlockSpec((H, H), lambda b: (0, 0)),          # w_hh
                pl.BlockSpec((1, H), lambda b: (0, 0)),          # b_ih + b_hh
                pl.BlockSpec((H, H), lambda b: (0, 0)),          # w_fc
                pl.BlockSpec((1, H), lambda b: (0, 0)),          # n_win * b_fc
            ],
            out_specs=pl.BlockSpec((tb, H), lambda b: (b, 0)),
        ),
        compiler_params=pltpu.CompilerParams(
            # Moot at grid=1; when block_b splits a large batch this lets the
            # axis be treated as independent.  Use pltpu.CORE_PARALLEL only if
            # explicitly targeting v7x megacore with >~1 us of work per block.
            dimension_semantics=("parallel",)),
        cost_estimate=pl.CostEstimate(
            flops=flops, transcendentals=transcendentals,
            bytes_accessed=bytes_accessed),
    )(x, w_ih_m, w_hh_m, bias, w_fc_m, b_fc_scaled)


def _reference_forward(x, params, k):
    """Pure-JAX f32 replica of the PyTorch module forward (use_state=False)."""
    w_ih, w_hh, b_ih, b_hh, w_fc, b_fc = params
    B, L, H = x.shape
    hp = jax.lax.Precision.HIGHEST
    # shift_stack: (B, L-k, k, H)
    shift_stack = jnp.stack([x[:, idx:L - k + idx, :] for idx in range(k)], axis=-2)
    seqs = shift_stack.reshape(-1, k, H)                       # (B*(L-k), k, H)
    h = jnp.zeros((seqs.shape[0], H), dtype=jnp.float32)
    for t in range(k):
        h = jnp.tanh(jnp.dot(seqs[:, t, :], w_ih, precision=hp)
                     + jnp.dot(h, w_hh, precision=hp) + b_ih + b_hh)
    rnn_sel = h.reshape(B, L - k, H)                           # last time step
    elu = jnp.where(rnn_sel > 0, rnn_sel, jnp.expm1(rnn_sel))
    y = jnp.dot(elu, w_fc, precision=hp) + b_fc
    return jnp.sum(y, axis=-2)


if __name__ == "__main__":
    # Module default hidden_dim=128, k=2; small batch / sequence length.
    B, L, H, K = 16, 16, 128, 2

    key = jax.random.PRNGKey(0)
    kx, k1, k2, k3, k4, k5, k6 = jax.random.split(key, 7)

    scale = 1.0 / jnp.sqrt(jnp.float32(H))
    x = jax.random.normal(kx, (B, L, H), dtype=jnp.float32)

    # Parameters stored pre-transposed to (in, out) so the kernel computes
    # x @ W (equivalent to PyTorch's x @ W^T).
    w_ih = jax.random.normal(k1, (H, H), dtype=jnp.float32) * scale
    w_hh = jax.random.normal(k2, (H, H), dtype=jnp.float32) * scale
    b_ih = jax.random.normal(k3, (1, H), dtype=jnp.float32) * scale
    b_hh = jax.random.normal(k4, (1, H), dtype=jnp.float32) * scale
    w_fc = jax.random.normal(k5, (H, H), dtype=jnp.float32) * scale
    b_fc = jax.random.normal(k6, (1, H), dtype=jnp.float32) * scale
    params = (w_ih, w_hh, b_ih, b_hh, w_fc, b_fc)

    ref = _reference_forward(x, params, K)

    # 1) f32 matmul operands: tight check against the module replica.
    prep_f32 = prepare_params(params, seq_len=L, k=K, matmul_dtype=jnp.float32)
    out_f32 = jax.block_until_ready(rnn_network_type_s(x, prep_f32, k=K))
    assert out_f32.shape == (B, H)
    err_f32 = jnp.max(jnp.abs(out_f32 - ref))
    assert jnp.allclose(out_f32, ref, atol=2e-3, rtol=2e-3), (
        f"f32 mismatch: max abs err {err_f32}")

    # 2) default bf16 matmul operands (v6e/v7x fast path): looser sanity check
    #    (bf16 operand rounding only; accumulation stays f32).
    prep_bf16 = prepare_params(params, seq_len=L, k=K, matmul_dtype=jnp.bfloat16)
    out_bf16 = jax.block_until_ready(rnn_network_type_s(x, prep_bf16, k=K))
    assert out_bf16.shape == (B, H)
    err_bf16 = jnp.max(jnp.abs(out_bf16 - ref))
    assert jnp.allclose(out_bf16, ref, atol=0.3, rtol=0.1), (
        f"bf16 mismatch: max abs err {err_bf16}")

    print("KERNEL_OK")
</pallas_src>

<mosaic_0001>
module attributes {stable_mosaic.version = 11 : i64} {
  func.func @_rnn_s_kernel(%arg0: i32, %arg1: memref<16x16x128xf32, #tpu.memory_space<vmem>>, %arg2: memref<128x128xf32, #tpu.memory_space<vmem>>, %arg3: memref<128x128xf32, #tpu.memory_space<vmem>>, %arg4: memref<1x128xf32, #tpu.memory_space<vmem>>, %arg5: memref<128x128xf32, #tpu.memory_space<vmem>>, %arg6: memref<1x128xf32, #tpu.memory_space<vmem>>, %arg7: memref<16x128xf32, #tpu.memory_space<vmem>>) attributes {dimension_semantics = [#tpu.dimension_semantics<parallel>], iteration_bounds = array<i64: 1>, scalar_prefetch = 0 : i64, scratch_operands = 0 : i64, tpu.core_type = #tpu.core_type<tc>, window_params = [{transform_indices = @transform_0, window_bounds = array<i64: 16, 16, 128>}, {pipeline_mode = #tpu.pipeline_mode<synchronous>, transform_indices = @transform_1, window_bounds = array<i64: 128, 128>}, {pipeline_mode = #tpu.pipeline_mode<synchronous>, transform_indices = @transform_2, window_bounds = array<i64: 128, 128>}, {pipeline_mode = #tpu.pipeline_mode<synchronous>, transform_indices = @transform_3, window_bounds = array<i64: 1, 128>}, {pipeline_mode = #tpu.pipeline_mode<synchronous>, transform_indices = @transform_4, window_bounds = array<i64: 128, 128>}, {pipeline_mode = #tpu.pipeline_mode<synchronous>, transform_indices = @transform_5, window_bounds = array<i64: 1, 128>}, {transform_indices = @transform_6, window_bounds = array<i64: 16, 128>}]} {
    %c0 = arith.constant 0 : index
    %c0_0 = arith.constant 0 : index
    %0 = vector.load %arg2[%c0, %c0_0] : memref<128x128xf32, #tpu.memory_space<vmem>>, vector<128x128xf32>
    %c0_1 = arith.constant 0 : index
    %c0_2 = arith.constant 0 : index
    %1 = vector.load %arg3[%c0_1, %c0_2] : memref<128x128xf32, #tpu.memory_space<vmem>>, vector<128x128xf32>
    %c0_3 = arith.constant 0 : index
    %c0_4 = arith.constant 0 : index
    %c0_5 = arith.constant 0 : index
    %2 = vector.load %arg1[%c0_3, %c0_4, %c0_5] : memref<16x16x128xf32, #tpu.memory_space<vmem>>, vector<16x16x128xf32>
    %3 = vector.shape_cast %2 : vector<16x16x128xf32> to vector<256x128xf32>
    %cst = arith.constant dense<0.000000e+00> : vector<256x128xf32>
    %4 = tpu.matmul %3, %0, %cst {dimension_numbers = #tpu.dot_dimension_numbers<[1], [0], [0], [1], [0, 0, 1, 1], [], []>} : vector<256x128xf32>, vector<128x128xf32>, vector<256x128xf32> -> vector<256x128xf32>
    %c0_6 = arith.constant 0 : index
    %c0_7 = arith.constant 0 : index
    %5 = vector.load %arg4[%c0_6, %c0_7] : memref<1x128xf32, #tpu.memory_space<vmem>>, vector<1x128xf32>
    %6 = vector.broadcast %5 : vector<1x128xf32> to vector<256x128xf32>
    %7 = arith.addf %4, %6 : vector<256x128xf32>
    %8 = math.tanh %7 : vector<256x128xf32>
    %c255_i32 = arith.constant 255 : i32
    %9 = tpu.dynamic_rotate %7 by %c255_i32 dim 0 : vector<256x128xf32>, i32 -> vector<256x128xf32>
    %cst_8 = arith.constant dense<0.000000e+00> : vector<256x128xf32>
    %10 = tpu.matmul %8, %1, %cst_8 {dimension_numbers = #tpu.dot_dimension_numbers<[1], [0], [0], [1], [0, 0, 1, 1], [], []>} : vector<256x128xf32>, vector<128x128xf32>, vector<256x128xf32> -> vector<256x128xf32>
    %11 = arith.addf %9, %10 : vector<256x128xf32>
    %12 = math.tanh %11 : vector<256x128xf32>
    %cst_9 = arith.constant 0.000000e+00 : f32
    %13 = vector.broadcast %cst_9 : f32 to vector<256x128xf32>
    %14 = arith.cmpf ogt, %12, %13 : vector<256x128xf32>
    %15 = math.exp %12 : vector<256x128xf32>
    %cst_10 = arith.constant 1.000000e+00 : f32
    %16 = vector.broadcast %cst_10 : f32 to vector<256x128xf32>
    %17 = arith.subf %15, %16 : vector<256x128xf32>
    %18 = arith.select %14, %12, %17 : vector<256x128xi1>, vector<256x128xf32>
    %19 = vector.shape_cast %18 : vector<256x128xf32> to vector<16x16x128xf32>
    %20 = vector.extract_strided_slice %19 {offsets = [0, 0, 0], sizes = [16, 14, 128], strides = [1, 1, 1]} : vector<16x16x128xf32> to vector<16x14x128xf32>
    %cst_11 = arith.constant dense<0.000000e+00> : vector<16x128xf32>
    %21 = vector.multi_reduction <add>, %20, %cst_11 [1] : vector<16x14x128xf32> to vector<16x128xf32>
    %c0_12 = arith.constant 0 : index
    %c0_13 = arith.constant 0 : index
    %22 = vector.load %arg5[%c0_12, %c0_13] : memref<128x128xf32, #tpu.memory_space<vmem>>, vector<128x128xf32>
    %cst_14 = arith.constant dense<0.000000e+00> : vector<16x128xf32>
    %23 = tpu.matmul %21, %22, %cst_14 {dimension_numbers = #tpu.dot_dimension_numbers<[1], [0], [0], [1], [0, 0, 1, 1], [], []>} : vector<16x128xf32>, vector<128x128xf32>, vector<16x128xf32> -> vector<16x128xf32>
    %c0_15 = arith.constant 0 : index
    %c0_16 = arith.constant 0 : index
    %24 = vector.load %arg6[%c0_15, %c0_16] : memref<1x128xf32, #tpu.memory_space<vmem>>, vector<1x128xf32>
    %25 = vector.broadcast %24 : vector<1x128xf32> to vector<16x128xf32>
    %26 = arith.addf %23, %25 : vector<16x128xf32>
    %c0_17 = arith.constant 0 : index
    %c0_18 = arith.constant 0 : index
    %27 = vector.load %arg7[%c0_17, %c0_18] : memref<16x128xf32, #tpu.memory_space<vmem>>, vector<16x128xf32>
    tpu.vector_store %arg7[%c0_17, %c0_18], %26 {strides = array<i32>} : memref<16x128xf32, #tpu.memory_space<vmem>>, vector<16x128xf32>,
    return
  }
  func.func @transform_0(%arg0: i32) -> (i32, i32, i32) {
    %c0_i32 = arith.constant 0 : i32
    %c0_i32_0 = arith.constant 0 : i32
    %c0_i32_1 = arith.constant 0 : i32
    return %arg0, %c0_i32, %c0_i32_0 : i32, i32, i32
  }
  func.func @transform_1(%arg0: i32) -> (i32, i32) {
    %c0_i32 = arith.constant 0 : i32
    %c0_i32_0 = arith.constant 0 : i32
    %c0_i32_1 = arith.constant 0 : i32
    return %c0_i32, %c0_i32_0 : i32, i32
  }
  func.func @transform_2(%arg0: i32) -> (i32, i32) {
    %c0_i32 = arith.constant 0 : i32
    %c0_i32_0 = arith.constant 0 : i32
    %c0_i32_1 = arith.constant 0 : i32
    return %c0_i32, %c0_i32_0 : i32, i32
  }
  func.func @transform_3(%arg0: i32) -> (i32, i32) {
    %c0_i32 = arith.constant 0 : i32
    %c0_i32_0 = arith.constant 0 : i32
    %c0_i32_1 = arith.constant 0 : i32
    return %c0_i32, %c0_i32_0 : i32, i32
  }
  func.func @transform_4(%arg0: i32) -> (i32, i32) {
    %c0_i32 = arith.constant 0 : i32
    %c0_i32_0 = arith.constant 0 : i32
    %c0_i32_1 = arith.constant 0 : i32
    return %c0_i32, %c0_i32_0 : i32, i32
  }
  func.func @transform_5(%arg0: i32) -> (i32, i32) {
    %c0_i32 = arith.constant 0 : i32
    %c0_i32_0 = arith.constant 0 : i32
    %c0_i32_1 = arith.constant 0 : i32
    return %c0_i32, %c0_i32_0 : i32, i32
  }
  func.func @transform_6(%arg0: i32) -> (i32, i32) {
    %c0_i32 = arith.constant 0 : i32
    %c0_i32_0 = arith.constant 0 : i32
    return %arg0, %c0_i32 : i32, i32
  }
}

</mosaic_0001>

<bundles_post_ra>
// kernel: tpu_custom_call.1
= control target key start
LH: loop header
LB: loop body
LE: loop exit
PB: predicated region body
PF: predicated region fallthrough
CT: control target
= control target key end

     0   :  { %11 = vsyncpa [#allocation3], 0  ;;  %s2415_s0 = inlined_call_operand.hbm [shape: f32[16,16,128], index: 0, kind: input, shape index: {}]   ;;  %s2416_s1 = inlined_call_operand.hbm [shape: f32[128,128], index: 1, kind: input, shape index: {}]   ;;  %s2417_s2 = inlined_call_operand.hbm [shape: f32[128,128], index: 2, kind: input, shape index: {}]   ;;  %s2418_s3 = inlined_call_operand.vmem [shape: f32[1,128], index: 3, kind: input, shape index: {}]   ;;  %s2419_s4 = inlined_call_operand.hbm [shape: f32[128,128], index: 4, kind: input, shape index: {}]   ;;  %s2420_s5 = inlined_call_operand.vmem [shape: f32[1,128], index: 5, kind: input, shape index: {}]   ;;  %s2421_s6 = inlined_call_operand.hbm [shape: f32[16,128], index: 6, kind: output, shape index: {}]  }
   0x1   :  { %12 = vsyncpa [#allocation6], 0 }
   0x2   :  { %13 = vsyncpa [#allocation9], 0 }
   0x3   :  { %14 = vsyncpa [#allocation4], 0  ;;  %s1860_s21 = smov [#allocation5]   ;;  %s1861_s23 = smov [#allocation2]  }
   0x4   :  { %s32_s22 = sshll.u32 %s1860_s21, 4  ;;  %s20_s24 = sshll.u32 %s1861_s23, 4  ;;  %s33_s22 = int_to_ptr.vmem [resolvable:$true] %s32_s22  ;;  %s21_s24 = int_to_ptr.vmem [resolvable:$true] %s20_s24 }
   0x5   :  { %s1760_s25 = scalar_lea.vmem %s33_s22, 2048  ;;  %p1765_p1 = scmp.lt.s32.totalorder %s33_s22, %s33_s22 }
   0x6   :  { %p1761_p0 = scmp.ne.s32.totalorder %s33_s22, %s1760_s25  ;;  %p1766_p2 = scmp.lt.s32.totalorder %s1760_s25, %s1760_s25 }
   0x8   :  { %p1767_p3 = por %p1766_p2, %p1765_p1 }
   0xa   :  { %p1768_p4 = pnand %p1767_p3, %p1761_p0 }
   0xc   :  { %1771 = shalt.err (!%p1768_p4)
}
   0xd   :  { %s1862_s26 = smov 128   ;;  %s1863_s27 = smov 8  }
   0xe   :  { %38 = dma.hbm_to_vmem [thread:$0]  %s2416_s1, 2048, %s33_s22, [#allocation6], %s1862_s26, %s1862_s26, %s1863_s27  }
   0xf   :  { %s1780_s30 = scalar_lea.vmem %s21_s24, 4096  ;;  %p1785_p6 = scmp.lt.s32.totalorder %s21_s24, %s21_s24 }
  0x10   :  { %p1781_p5 = scmp.ne.s32.totalorder %s21_s24, %s1780_s30  ;;  %p1786_p7 = scmp.lt.s32.totalorder %s1780_s30, %s1780_s30 }
  0x12   :  { %p1787_p8 = por %p1786_p7, %p1785_p6 }
  0x14   :  { %p1788_p9 = pnand %p1787_p8, %p1781_p5 }
  0x16   :  { %1791 = shalt.err (!%p1788_p9)
}
  0x17   :  { %26 = dma.hbm_to_vmem [thread:$0]  %s2415_s0, 4096, %s21_s24, [#allocation3], %s1862_s26, %s1862_s26, %s1863_s27  }
  0x18   :  { %s1864_s9 = smov [#allocation7]   ;;  %s1865_s11 = smov [#allocation8]  }
  0x19   :  { %s44_s10 = sshll.u32 %s1864_s9, 4  ;;  %s58_s12 = sshll.u32 %s1865_s11, 4  ;;  %s45_s10 = int_to_ptr.vmem [resolvable:$true] %s44_s10  ;;  %s59_s12 = int_to_ptr.vmem [resolvable:$true] %s58_s12 }
  0x1a   :  { %s1800_s1 = scalar_lea.vmem %s45_s10, 2048  ;;  %p1805_p11 = scmp.lt.s32.totalorder %s45_s10, %s45_s10 }
  0x1b   :  { %p1801_p10 = scmp.ne.s32.totalorder %s45_s10, %s1800_s1  ;;  %p1806_p12 = scmp.lt.s32.totalorder %s1800_s1, %s1800_s1 }
  0x1d   :  { %p1807_p13 = por %p1806_p12, %p1805_p11 }
  0x1f   :  { %p1808_p0 = pnand %p1807_p13, %p1801_p10 }
  0x21   :  { %1811 = shalt.err (!%p1808_p0)
}
  0x22   :  { %50 = dma.hbm_to_vmem [thread:$0]  %s2417_s2, 2048, %s45_s10, [#allocation6], %s1862_s26, %s1862_s26, %s1863_s27  }
  0x23   :  { %s1820_s0 = scalar_lea.vmem %s59_s12, 2048  ;;  %p1825_p2 = scmp.lt.s32.totalorder %s59_s12, %s59_s12 }
  0x24   :  { %p1821_p1 = scmp.ne.s32.totalorder %s59_s12, %s1820_s0  ;;  %p1826_p3 = scmp.lt.s32.totalorder %s1820_s0, %s1820_s0 }
  0x26   :  { %p1827_p4 = por %p1826_p3, %p1825_p2 }
  0x28   :  { %p1828_p5 = pnand %p1827_p4, %p1821_p1 }
  0x2a   :  { %1831 = shalt.err (!%p1828_p5)
}
  0x2b   :  { %64 = dma.hbm_to_vmem [thread:$0]  %s2419_s4, 2048, %s59_s12, [#allocation9], %s1862_s26, %s1862_s26, %s1863_s27  }
  0x2c   :  { %1852 = dma.done.wait [#allocation3], 4096  }
  0x2d   :  { %1853 = vsyncadd [#allocation3], 4294963200 }
  0x2e   :  { %1854 = dma.done.wait [#allocation6], 4096  }
  0x2f   :  { %1855 = vsyncadd [#allocation6], 4294963200 }
  0x30   :  { %1856 = dma.done.wait [#allocation9], 2048  }
  0x31   :  { %1857 = vsyncadd [#allocation9], 4294965248  ;;  %v94_v0 = vld [vmem:[#allocation5 + $0x78] sm:$0xff]  ;;  %v93_v1 = vld [vmem:[#allocation5 + $0x70] sm:$0xff]  ;;  %vm923_vm1 = vcmask 1045504   ;;  %s1866_s18 = smov [#allocation10]  }
  0x32   :  { %1358 = vmatprep.subr.mxu0 %v94_v0  ;;  %v92_v2 = vld [vmem:[#allocation5 + $0x68] sm:$0xff]  ;;  %v91_v3 = vld [vmem:[#allocation5 + $0x60] sm:$0xff]  ;;  %v90_v5 = vld [vmem:[#allocation5 + $0x58] sm:$0xff]  ;;  %s1196_s19 = sshll.u32 %s1866_s18, 4  ;;  %s1197_s19 = int_to_ptr.vmem [resolvable:$true] %s1196_s19 }
  0x33   :  { %1359 = vmatpush3.msra.mxu0 %v94_v0  ;;  %v111_v4 = vld [vmem:[#allocation2] sm:$0xff]  ;;  %v89_v6 = vld [vmem:[#allocation5 + $0x50] sm:$0xff]  ;;  %v88_v7 = vld [vmem:[#allocation5 + $0x48] sm:$0xff]  ;;  %v439_v0 = vlaneseq  ;;  %s1832_s20 = scalar_lea.vmem %s1197_s19, 256  ;;  %p1837_p7 = scmp.lt.s32.totalorder %s1197_s19, %s1197_s19 }
  0x34   :  { %1360 = vmatprep.subr.mxu0 %v93_v1  ;;  %1390 = vmatprep.mubr.f32.mxu0 %v111_v4  ;;  %v87_v8 = vld [vmem:[#allocation5 + $0x40] sm:$0xff]  ;;  %v86_v9 = vld [vmem:[#allocation5 + $0x38] sm:$0xff]  ;;  %v85_v10 = vld [vmem:[#allocation5 + $0x30] sm:$0xff]  ;;  %p1833_p6 = scmp.ne.s32.totalorder %s1197_s19, %s1832_s20  ;;  %p1838_p8 = scmp.lt.s32.totalorder %s1832_s20, %s1832_s20 }
  0x35   :  { %1361 = vmatpush3.msra.mxu0 %v93_v1  ;;  %v110_v11 = vld [vmem:[#allocation7 + $0x78] sm:$0xff]  ;;  %v109_v12 = vld [vmem:[#allocation7 + $0x70] sm:$0xff]  ;;  %v84_v13 = vld [vmem:[#allocation5 + $0x28] sm:$0xff] }
  0x36   :  { %1362 = vmatprep.subr.mxu0 %v92_v2  ;;  %1438 = vmatprep.subr.mxu1 %v110_v11  ;;  %v108_v14 = vld [vmem:[#allocation7 + $0x68] sm:$0xff]  ;;  %v83_v15 = vld [vmem:[#allocation5 + $0x20] sm:$0xff]  ;;  %v82_v17 = vld [vmem:[#allocation5 + $0x18] sm:$0xff]  ;;  %p1839_p9 = por %p1838_p8, %p1837_p7 }
  0x37   :  { %1363 = vmatpush3.msra.mxu0 %v92_v2  ;;  %1439 = vmatpush3.msra.mxu1 %v110_v11  ;;  %v107_v16 = vld [vmem:[#allocation7 + $0x60] sm:$0xff]  ;;  %v106_v18 = vld [vmem:[#allocation7 + $0x58] sm:$0xff]  ;;  %v81_v19 = vld [vmem:[#allocation5 + $0x10] sm:$0xff] }
  0x38   :  { %1364 = vmatprep.subr.mxu0 %v91_v3  ;;  %1440 = vmatprep.subr.mxu1 %v109_v12  ;;  %v105_v20 = vld [vmem:[#allocation7 + $0x50] sm:$0xff]  ;;  %v80_v21 = vld [vmem:[#allocation5 + $0x8] sm:$0xff]  ;;  %v79_v22 = vld [vmem:[#allocation5] sm:$0xff]  ;;  %p1840_p10 = pnand %p1839_p9, %p1833_p6 }
  0x39   :  { %1365 = vmatpush3.msra.mxu0 %v91_v3  ;;  %1441 = vmatpush3.msra.mxu1 %v109_v12  ;;  %v112_v23 = vld [vmem:[#allocation2 + $0x8] sm:$0xff]  ;;  %v113_v24 = vld [vmem:[#allocation2 + $0x10] sm:$0xff]  ;;  %v114_v25 = vld [vmem:[#allocation2 + $0x18] sm:$0xff]  ;;  %v1931_v3 = vshrl.u32 %v439_v0, 7 }
  0x3a   :  { %1366 = vmatprep.subr.mxu0 %v90_v5  ;;  %1442 = vmatprep.subr.mxu1 %v108_v14  ;;  %v115_v26 = vld [vmem:[#allocation2 + $0x20] sm:$0xff]  ;;  %v116_v27 = vld [vmem:[#allocation2 + $0x28] sm:$0xff]  ;;  %v117_v28 = vld [vmem:[#allocation2 + $0x30] sm:$0xff] }
  0x3b   :  { %1367 = vmatpush3.msra.mxu0 %v90_v5  ;;  %1443 = vmatpush3.msra.mxu1 %v108_v14  ;;  %v118_v29 = vld [vmem:[#allocation2 + $0x38] sm:$0xff]  ;;  %v119_v30 = vld [vmem:[#allocation2 + $0x40] sm:$0xff]  ;;  %v120_v31 = vld [vmem:[#allocation2 + $0x48] sm:$0xff]  ;;  %vm441_vm0 = vcmp.lt.s32.totalorder %v1931_v3, 7 }
  0x3c   :  { %1368 = vmatprep.subr.mxu0 %v89_v6  ;;  %1444 = vmatprep.subr.mxu1 %v107_v16  ;;  %v121_v32 = vld [vmem:[#allocation2 + $0x50] sm:$0xff]  ;;  %v122_v33 = vld [vmem:[#allocation2 + $0x58] sm:$0xff]  ;;  %v123_v34 = vld [vmem:[#allocation2 + $0x60] sm:$0xff] }
  0x3d   :  { %1369 = vmatpush3.msra.mxu0 %v89_v6  ;;  %1445 = vmatpush3.msra.mxu1 %v107_v16  ;;  %v124_v35 = vld [vmem:[#allocation2 + $0x68] sm:$0xff]  ;;  %v125_v36 = vld [vmem:[#allocation2 + $0x70] sm:$0xff]  ;;  %v126_v37 = vld [vmem:[#allocation2 + $0x78] sm:$0xff] }
  0x3e   :  { %1370 = vmatprep.subr.mxu0 %v88_v7  ;;  %1446 = vmatprep.subr.mxu1 %v106_v18  ;;  %v127_v38 = vld [vmem:[#allocation2 + $0x80] sm:$0xff]  ;;  %v128_v39 = vld [vmem:[#allocation2 + $0x88] sm:$0xff]  ;;  %v129_v40 = vld [vmem:[#allocation2 + $0x90] sm:$0xff] }
  0x3f   :  { %1371 = vmatpush3.msra.mxu0 %v88_v7  ;;  %1447 = vmatpush3.msra.mxu1 %v106_v18  ;;  %v130_v41 = vld [vmem:[#allocation2 + $0x98] sm:$0xff]  ;;  %v131_v42 = vld [vmem:[#allocation2 + $0xa0] sm:$0xff]  ;;  %v132_v43 = vld [vmem:[#allocation2 + $0xa8] sm:$0xff] }
  0x40   :  { %1372 = vmatprep.subr.mxu0 %v87_v8  ;;  %1448 = vmatprep.subr.mxu1 %v105_v20  ;;  %v133_v44 = vld [vmem:[#allocation2 + $0xb0] sm:$0xff]  ;;  %v134_v45 = vld [vmem:[#allocation2 + $0xb8] sm:$0xff]  ;;  %v135_v46 = vld [vmem:[#allocation2 + $0xc0] sm:$0xff] }
  0x41   :  { %1373 = vmatpush3.msra.mxu0 %v87_v8  ;;  %1449 = vmatpush3.msra.mxu1 %v105_v20  ;;  %v136_v47 = vld [vmem:[#allocation2 + $0xc8] sm:$0xff]  ;;  %v137_v48 = vld [vmem:[#allocation2 + $0xd0] sm:$0xff]  ;;  %v138_v49 = vld [vmem:[#allocation2 + $0xd8] sm:$0xff] }
  0x42   :  { %1374 = vmatprep.subr.mxu0 %v86_v9  ;;  %v139_v50 = vld [vmem:[#allocation2 + $0xe0] sm:$0xff]  ;;  %v140_v51 = vld [vmem:[#allocation2 + $0xe8] sm:$0xff]  ;;  %v141_v52 = vld [vmem:[#allocation2 + $0xf0] sm:$0xff] }
  0x43   :  { %1375 = vmatpush3.msra.mxu0 %v86_v9  ;;  %v142_v53 = vld [vmem:[#allocation2 + $0xf8] sm:$0xff]  ;;  %v104_v54 = vld [vmem:[#allocation7 + $0x48] sm:$0xff]  ;;  %v103_v55 = vld [vmem:[#allocation7 + $0x40] sm:$0xff] }
  0x44   :  { %1376 = vmatprep.subr.mxu0 %v85_v10  ;;  %1450 = vmatprep.subr.mxu1 %v104_v54  ;;  %v102_v56 = vld [vmem:[#allocation7 + $0x38] sm:$0xff]  ;;  %v101_v57 = vld [vmem:[#allocation7 + $0x30] sm:$0xff]  ;;  %v100_v58 = vld [vmem:[#allocation7 + $0x28] sm:$0xff] }
  0x45   :  { %1377 = vmatpush3.msra.mxu0 %v85_v10  ;;  %1451 = vmatpush3.msra.mxu1 %v104_v54  ;;  %v99_v59 = vld [vmem:[#allocation7 + $0x20] sm:$0xff]  ;;  %v98_v60 = vld [vmem:[#allocation7 + $0x18] sm:$0xff]  ;;  %v97_v61 = vld [vmem:[#allocation7 + $0x10] sm:$0xff] }
  0x46   :  { %1378 = vmatprep.subr.mxu0 %v84_v13  ;;  %1452 = vmatprep.subr.mxu1 %v103_v55  ;;  %v96_v62 = vld [vmem:[#allocation7 + $0x8] sm:$0xff]  ;;  %v95_v63 = vld [vmem:[#allocation7] sm:$0xff] }
  0x47   :  { %1379 = vmatpush3.msra.mxu0 %v84_v13  ;;  %1453 = vmatpush3.msra.mxu1 %v103_v55  ;;  %v1929_v1 = vld [vmem:[%s2418_s3] ss:$0 sm:$0xff]  ;;  %v1065_v3 = vld [vmem:[#allocation8 + $0x68] sm:$0xff] }
  0x48   :  { %1380 = vmatprep.subr.mxu0 %v83_v15  ;;  %1454 = vmatprep.subr.mxu1 %v102_v56 }
  0x49   :  { %1381 = vmatpush3.msra.mxu0 %v83_v15  ;;  %1455 = vmatpush3.msra.mxu1 %v102_v56 }
  0x4a   :  { %1382 = vmatprep.subr.mxu0 %v82_v17  ;;  %1456 = vmatprep.subr.mxu1 %v101_v57 }
  0x4b   :  { %1383 = vmatpush3.msra.mxu0 %v82_v17  ;;  %1457 = vmatpush3.msra.mxu1 %v101_v57 }
  0x4c   :  { %1384 = vmatprep.subr.mxu0 %v81_v19  ;;  %1458 = vmatprep.subr.mxu1 %v100_v58 }
  0x4d   :  { %1385 = vmatpush3.msra.mxu0 %v81_v19  ;;  %1459 = vmatpush3.msra.mxu1 %v100_v58 }
  0x4e   :  { %1386 = vmatprep.subr.mxu0 %v80_v21  ;;  %1460 = vmatprep.subr.mxu1 %v99_v59 }
  0x4f   :  { %1387 = vmatpush3.msra.mxu0 %v80_v21  ;;  %1461 = vmatpush3.msra.mxu1 %v99_v59 }
  0x50   :  { %1388 = vmatprep.subr.mxu0 %v79_v22  ;;  %1462 = vmatprep.subr.mxu1 %v98_v60 }
  0x51   :  { %1389 = vmatpush3.msra.mxu0 %v79_v22  ;;  %1463 = vmatpush3.msra.mxu1 %v98_v60 }
  0x52   :  { %1391 = vmatmul.mubr.f32.vlgmr.msra.gmra.mxu0 %v112_v23  ;;  %1464 = vmatprep.subr.mxu1 %v97_v61 }
  0x53   :  { %1393 = vmatprep.mubr.f32.mxu0 %v113_v24  ;;  %1465 = vmatpush3.msra.mxu1 %v97_v61 }
  0x54   :  { %1466 = vmatprep.subr.mxu1 %v96_v62 }
  0x55   :  { %1467 = vmatpush3.msra.mxu1 %v96_v62 }
  0x56   :  { %1394 = vmatmul.mubr.f32.gmra.mxu0 %v114_v25  ;;  %1468 = vmatprep.subr.mxu1 %v95_v63 }
  0x57   :  { %1396 = vmatprep.mubr.f32.mxu0 %v115_v26  ;;  %1469 = vmatpush3.msra.mxu1 %v95_v63 }
  0x5a   :  { %1397 = vmatmul.mubr.f32.gmra.mxu0 %v116_v27 }
  0x5b   :  { %1399 = vmatprep.mubr.f32.mxu0 %v117_v28 }
  0x5e   :  { %1400 = vmatmul.mubr.f32.gmra.mxu0 %v118_v29 }
  0x5f   :  { %1402 = vmatprep.mubr.f32.mxu0 %v119_v30 }
  0x62   :  { %1403 = vmatmul.mubr.f32.gmra.mxu0 %v120_v31 }
  0x63   :  { %1405 = vmatprep.mubr.f32.mxu0 %v121_v32 }
  0x66   :  { %1406 = vmatmul.mubr.f32.gmra.mxu0 %v122_v33 }
  0x67   :  { %1408 = vmatprep.mubr.f32.mxu0 %v123_v34 }
  0x6a   :  { %1409 = vmatmul.mubr.f32.gmra.mxu0 %v124_v35 }
  0x6b   :  { %1411 = vmatprep.mubr.f32.mxu0 %v125_v36 }
  0x6e   :  { %1412 = vmatmul.mubr.f32.gmra.mxu0 %v126_v37 }
  0x6f   :  { %1414 = vmatprep.mubr.f32.mxu0 %v127_v38 }
  0x72   :  { %1415 = vmatmul.mubr.f32.gmra.mxu0 %v128_v39 }
  0x73   :  { %1417 = vmatprep.mubr.f32.mxu0 %v129_v40 }
  0x76   :  { %1418 = vmatmul.mubr.f32.gmra.mxu0 %v130_v41 }
  0x77   :  { %1420 = vmatprep.mubr.f32.mxu0 %v131_v42 }
  0x7a   :  { %1421 = vmatmul.mubr.f32.gmra.mxu0 %v132_v43 }
  0x7b   :  { %1423 = vmatprep.mubr.f32.mxu0 %v133_v44 }
  0x7e   :  { %1424 = vmatmul.mubr.f32.gmra.mxu0 %v134_v45 }
  0x7f   :  { %1426 = vmatprep.mubr.f32.mxu0 %v135_v46 }
  0x82   :  { %1427 = vmatmul.mubr.f32.gmra.mxu0 %v136_v47 }
  0x83   :  { %1429 = vmatprep.mubr.f32.mxu0 %v137_v48 }
  0x86   :  { %1430 = vmatmul.mubr.f32.gmra.mxu0 %v138_v49 }
  0x87   :  { %1432 = vmatprep.mubr.f32.mxu0 %v139_v50 }
  0x8a   :  { %1433 = vmatmul.mubr.f32.gmra.mxu0 %v140_v51 }
  0x8b   :  { %1435 = vmatprep.mubr.f32.mxu0 %v141_v52 }
  0x8e   :  { %1436 = vmatmul.mubr.f32.gmra.mxu0 %v142_v53 }
 0x112   :  { %v1392_v2 = vpop.f32.mrf.mxu0 }
 0x113   :  { %v222_v4 = vadd.f32 %v1392_v2, %v1929_v1 }
 0x114   :  { %v216_v5 = vpop.f32.mrf.mxu0 }
 0x115   :  { %v1935_v6 = vadd.f32 %v1929_v1, %v216_v5  ;;  %v408_v8 = vrot.slane %v222_v4, 1 }
 0x116   :  { %v1395_v7 = vpop.f32.mrf.mxu0 }
 0x117   :  { %1560 = vtanh.f32 %v1935_v6  ;;  %v407_v9 = vrot.slane %v1935_v6, 1  ;;  %v232_v10 = vadd.f32 %v1395_v7, %v1929_v1 }
 0x118   :  { %1562 = vtanh.f32 %v222_v4  ;;  %v226_v11 = vpop.f32.mrf.mxu0 }
 0x119   :  { %v227_v12 = vadd.f32 %v1929_v1, %v226_v11  ;;  %v1946_v13 = vsel %vm441_vm0, %v407_v9, %v408_v8  ;;  %v410_v16 = vrot.slane %v232_v10, 1 }
 0x11a   :  { %v1398_v14 = vpop.f32.mrf.mxu0 }
 0x11b   :  { %1564 = vtanh.f32 %v227_v12  ;;  %v409_v15 = vrot.slane %v227_v12, 1  ;;  %v242_v17 = vadd.f32 %v1398_v14, %v1929_v1 }
 0x11c   :  { %1566 = vtanh.f32 %v232_v10  ;;  %v236_v18 = vpop.f32.mrf.mxu0 }
 0x11d   :  { %v237_v19 = vadd.f32 %v1929_v1, %v236_v18  ;;  %v1952_v20 = vsel %vm441_vm0, %v408_v8, %v409_v15  ;;  %v1956_v22 = vsel %vm441_vm0, %v409_v15, %v410_v16  ;;  %v412_v24 = vrot.slane %v242_v17, 1 }
 0x11e   :  { %v1401_v21 = vpop.f32.mrf.mxu0 }
 0x11f   :  { %1568 = vtanh.f32 %v237_v19  ;;  %v411_v23 = vrot.slane %v237_v19, 1  ;;  %v252_v25 = vadd.f32 %v1401_v21, %v1929_v1 }
 0x120   :  { %1570 = vtanh.f32 %v242_v17  ;;  %v246_v26 = vpop.f32.mrf.mxu0 }
 0x121   :  { %v247_v27 = vadd.f32 %v1929_v1, %v246_v26  ;;  %v1962_v28 = vsel %vm441_vm0, %v410_v16, %v411_v23  ;;  %v1966_v30 = vsel %vm441_vm0, %v411_v23, %v412_v24  ;;  %v414_v33 = vrot.slane %v252_v25, 1 }
 0x122   :  { %v1404_v29 = vpop.f32.mrf.mxu0 }
 0x123   :  { %1572 = vtanh.f32 %v247_v27  ;;  %v413_v31 = vrot.slane %v247_v27, 1  ;;  %v262_v34 = vadd.f32 %v1404_v29, %v1929_v1 }
 0x124   :  { %v1561_v32 = vpop.eup %1560  ;;  %1574 = vtanh.f32 %v252_v25  ;;  %v256_v35 = vpop.f32.mrf.mxu0 }
 0x125   :  { %v1563_v36 = vpop.eup %1562  ;;  %v257_v37 = vadd.f32 %v1929_v1, %v256_v35  ;;  %1470 = vmatprep.mubr.f32.mxu1 %v1561_v32  ;;  %v1972_v38 = vsel %vm441_vm0, %v412_v24, %v413_v31  ;;  %v1976_v40 = vsel %vm441_vm0, %v413_v31, %v414_v33  ;;  %v416_v43 = vrot.slane %v262_v34, 1 }
 0x126   :  { %v1407_v39 = vpop.f32.mrf.mxu0  ;;  %1471 = vmatmul.mubr.f32.vlgmr.msra.gmra.mxu1 %v1563_v36 }
 0x127   :  { %1576 = vtanh.f32 %v257_v37  ;;  %v415_v41 = vrot.slane %v257_v37, 1  ;;  %v272_v44 = vadd.f32 %v1407_v39, %v1929_v1 }
 0x128   :  { %v1565_v42 = vpop.eup %1564  ;;  %1578 = vtanh.f32 %v262_v34  ;;  %v266_v45 = vpop.f32.mrf.mxu0 }
 0x129   :  { %v1567_v46 = vpop.eup %1566  ;;  %v267_v47 = vadd.f32 %v1929_v1, %v266_v45  ;;  %1473 = vmatprep.mubr.f32.mxu1 %v1565_v42  ;;  %v1982_v48 = vsel %vm441_vm0, %v414_v33, %v415_v41  ;;  %v1986_v50 = vsel %vm441_vm0, %v415_v41, %v416_v43  ;;  %v418_v53 = vrot.slane %v272_v44, 1 }
 0x12a   :  { %v1410_v49 = vpop.f32.mrf.mxu0  ;;  %1474 = vmatmul.mubr.f32.gmra.mxu1 %v1567_v46 }
 0x12b   :  { %1580 = vtanh.f32 %v267_v47  ;;  %v417_v51 = vrot.slane %v267_v47, 1  ;;  %v282_v54 = vadd.f32 %v1410_v49, %v1929_v1 }
 0x12c   :  { %v1569_v52 = vpop.eup %1568  ;;  %1582 = vtanh.f32 %v272_v44  ;;  %v276_v55 = vpop.f32.mrf.mxu0 }
 0x12d   :  { %v1571_v56 = vpop.eup %1570  ;;  %v277_v57 = vadd.f32 %v1929_v1, %v276_v55  ;;  %1476 = vmatprep.mubr.f32.mxu1 %v1569_v52  ;;  %v1992_v58 = vsel %vm441_vm0, %v416_v43, %v417_v51  ;;  %v1996_v60 = vsel %vm441_vm0, %v417_v51, %v418_v53  ;;  %v420_v63 = vrot.slane %v282_v54, 1 }
 0x12e   :  { %v1413_v59 = vpop.f32.mrf.mxu0  ;;  %1477 = vmatmul.mubr.f32.gmra.mxu1 %v1571_v56 }
 0x12f   :  { %1584 = vtanh.f32 %v277_v57  ;;  %v419_v61 = vrot.slane %v277_v57, 1  ;;  %v292_v0 = vadd.f32 %v1413_v59, %v1929_v1 }
 0x130   :  { %v1573_v62 = vpop.eup %1572  ;;  %1586 = vtanh.f32 %v282_v54  ;;  %v286_v2 = vpop.f32.mrf.mxu0 }
 0x131   :  { %v1575_v4 = vpop.eup %1574  ;;  %v287_v5 = vadd.f32 %v1929_v1, %v286_v2  ;;  %1479 = vmatprep.mubr.f32.mxu1 %v1573_v62  ;;  %v2002_v7 = vsel %vm441_vm0, %v418_v53, %v419_v61  ;;  %v2006_v10 = vsel %vm441_vm0, %v419_v61, %v420_v63  ;;  %v422_v14 = vrot.slane %v292_v0, 1 }
 0x132   :  { %v1416_v8 = vpop.f32.mrf.mxu0  ;;  %1480 = vmatmul.mubr.f32.gmra.mxu1 %v1575_v4 }
 0x133   :  { %1588 = vtanh.f32 %v287_v5  ;;  %v421_v11 = vrot.slane %v287_v5, 1  ;;  %v302_v15 = vadd.f32 %v1416_v8, %v1929_v1 }
 0x134   :  { %v1577_v12 = vpop.eup %1576  ;;  %1590 = vtanh.f32 %v292_v0  ;;  %v296_v16 = vpop.f32.mrf.mxu0 }
 0x135   :  { %v1579_v17 = vpop.eup %1578  ;;  %v297_v18 = vadd.f32 %v1929_v1, %v296_v16  ;;  %1482 = vmatprep.mubr.f32.mxu1 %v1577_v12  ;;  %v2012_v19 = vsel %vm441_vm0, %v420_v63, %v421_v11  ;;  %v2016_v23 = vsel %vm441_vm0, %v421_v11, %v422_v14  ;;  %v424_v26 = vrot.slane %v302_v15, 1 }
 0x136   :  { %v1419_v21 = vpop.f32.mrf.mxu0  ;;  %1483 = vmatmul.mubr.f32.gmra.mxu1 %v1579_v17 }
 0x137   :  { %1592 = vtanh.f32 %v297_v18  ;;  %v423_v24 = vrot.slane %v297_v18, 1  ;;  %v312_v27 = vadd.f32 %v1419_v21, %v1929_v1 }
 0x138   :  { %v1581_v25 = vpop.eup %1580  ;;  %1594 = vtanh.f32 %v302_v15  ;;  %v306_v29 = vpop.f32.mrf.mxu0 }
 0x139   :  { %v1583_v31 = vpop.eup %1582  ;;  %v307_v32 = vadd.f32 %v1929_v1, %v306_v29  ;;  %1485 = vmatprep.mubr.f32.mxu1 %v1581_v25  ;;  %v2022_v33 = vsel %vm441_vm0, %v422_v14, %v423_v24  ;;  %v2026_v35 = vsel %vm441_vm0, %v423_v24, %v424_v26  ;;  %v426_v39 = vrot.slane %v312_v27, 1 }
 0x13a   :  { %v1422_v34 = vpop.f32.mrf.mxu0  ;;  %1486 = vmatmul.mubr.f32.gmra.mxu1 %v1583_v31 }
 0x13b   :  { %1596 = vtanh.f32 %v307_v32  ;;  %v425_v36 = vrot.slane %v307_v32, 1  ;;  %v322_v41 = vadd.f32 %v1422_v34, %v1929_v1 }
 0x13c   :  { %v1585_v37 = vpop.eup %1584  ;;  %1598 = vtanh.f32 %v312_v27  ;;  %v316_v42 = vpop.f32.mrf.mxu0 }
 0x13d   :  { %v1587_v43 = vpop.eup %1586  ;;  %v317_v44 = vadd.f32 %v1929_v1, %v316_v42  ;;  %1488 = vmatprep.mubr.f32.mxu1 %v1585_v37  ;;  %v2032_v45 = vsel %vm441_vm0, %v424_v26, %v425_v36  ;;  %v2036_v47 = vsel %vm441_vm0, %v425_v36, %v426_v39  ;;  %v428_v52 = vrot.slane %v322_v41, 1 }
 0x13e   :  { %v1425_v46 = vpop.f32.mrf.mxu0  ;;  %1489 = vmatmul.mubr.f32.gmra.mxu1 %v1587_v43 }
 0x13f   :  { %1600 = vtanh.f32 %v317_v44  ;;  %v427_v49 = vrot.slane %v317_v44, 1  ;;  %v332_v53 = vadd.f32 %v1425_v46, %v1929_v1 }
 0x140   :  { %v1589_v51 = vpop.eup %1588  ;;  %1602 = vtanh.f32 %v322_v41  ;;  %v326_v54 = vpop.f32.mrf.mxu0 }
 0x141   :  { %v1591_v55 = vpop.eup %1590  ;;  %v327_v56 = vadd.f32 %v1929_v1, %v326_v54  ;;  %1491 = vmatprep.mubr.f32.mxu1 %v1589_v51  ;;  %v2042_v57 = vsel %vm441_vm0, %v426_v39, %v427_v49  ;;  %v2046_v61 = vsel %vm441_vm0, %v427_v49, %v428_v52  ;;  %v430_v0 = vrot.slane %v332_v53, 1 }
 0x142   :  { %v1428_v59 = vpop.f32.mrf.mxu0  ;;  %1492 = vmatmul.mubr.f32.gmra.mxu1 %v1591_v55 }
 0x143   :  { %1604 = vtanh.f32 %v327_v56  ;;  %v429_v62 = vrot.slane %v327_v56, 1  ;;  %v342_v2 = vadd.f32 %v1428_v59, %v1929_v1 }
 0x144   :  { %v1593_v63 = vpop.eup %1592  ;;  %1606 = vtanh.f32 %v332_v53  ;;  %v336_v4 = vpop.f32.mrf.mxu0 }
 0x145   :  { %v1595_v5 = vpop.eup %1594  ;;  %v337_v8 = vadd.f32 %v1929_v1, %v336_v4  ;;  %1494 = vmatprep.mubr.f32.mxu1 %v1593_v63  ;;  %v2052_v11 = vsel %vm441_vm0, %v428_v52, %v429_v62  ;;  %v2056_v14 = vsel %vm441_vm0, %v429_v62, %v430_v0  ;;  %v432_v17 = vrot.slane %v342_v2, 1 }
 0x146   :  { %v1431_v12 = vpop.f32.mrf.mxu0  ;;  %1495 = vmatmul.mubr.f32.gmra.mxu1 %v1595_v5 }
 0x147   :  { %1608 = vtanh.f32 %v337_v8  ;;  %v431_v15 = vrot.slane %v337_v8, 1  ;;  %v352_v18 = vadd.f32 %v1431_v12, %v1929_v1 }
 0x148   :  { %v1597_v16 = vpop.eup %1596  ;;  %1610 = vtanh.f32 %v342_v2  ;;  %v346_v21 = vpop.f32.mrf.mxu0 }
 0x149   :  { %v1599_v24 = vpop.eup %1598  ;;  %v347_v25 = vadd.f32 %v1929_v1, %v346_v21  ;;  %1497 = vmatprep.mubr.f32.mxu1 %v1597_v16  ;;  %v2062_v26 = vsel %vm441_vm0, %v430_v0, %v431_v15  ;;  %v2066_v29 = vsel %vm441_vm0, %v431_v15, %v432_v17  ;;  %v434_v34 = vrot.slane %v352_v18, 1  ;;  %v1064_v21 = vld [vmem:[#allocation8 + $0x60] sm:$0xff] }
 0x14a   :  { %v1434_v27 = vpop.f32.mrf.mxu0  ;;  %1498 = vmatmul.mubr.f32.gmra.mxu1 %v1599_v24  ;;  %v1063_v24 = vld [vmem:[#allocation8 + $0x58] sm:$0xff] }
 0x14b   :  { %1612 = vtanh.f32 %v347_v25  ;;  %v433_v31 = vrot.slane %v347_v25, 1  ;;  %v362_v36 = vadd.f32 %v1434_v27, %v1929_v1  ;;  %v1062_v25 = vld [vmem:[#allocation8 + $0x50] sm:$0xff]  ;;  %v1061_v27 = vld [vmem:[#allocation8 + $0x48] sm:$0xff] }
 0x14c   :  { %v1601_v32 = vpop.eup %1600  ;;  %1614 = vtanh.f32 %v352_v18  ;;  %v356_v37 = vpop.f32.mrf.mxu0  ;;  %v1066_v18 = vld [vmem:[#allocation8 + $0x70] sm:$0xff] }
 0x14d   :  { %v1603_v39 = vpop.eup %1602  ;;  %v357_v41 = vadd.f32 %v1929_v1, %v356_v37  ;;  %1500 = vmatprep.mubr.f32.mxu1 %v1601_v32  ;;  %v2072_v42 = vsel %vm441_vm0, %v432_v17, %v433_v31  ;;  %v2076_v44 = vsel %vm441_vm0, %v433_v31, %v434_v34  ;;  %v436_v52 = vrot.slane %v362_v36, 1  ;;  %v1067_v17 = vld [vmem:[#allocation8 + $0x78] sm:$0xff]  ;;  %v1060_v31 = vld [vmem:[#allocation8 + $0x40] sm:$0xff] }
 0x14e   :  { %v1437_v43 = vpop.f32.mrf.mxu0  ;;  %1501 = vmatmul.mubr.f32.gmra.mxu1 %v1603_v39  ;;  %1518 = vmatprep.subr.mxu0 %v1067_v17  ;;  %v1059_v32 = vld [vmem:[#allocation8 + $0x38] sm:$0xff]  ;;  %v1056_v37 = vld [vmem:[#allocation8 + $0x20] sm:$0xff] }
 0x14f   :  { %1616 = vtanh.f32 %v357_v41  ;;  %v435_v46 = vrot.slane %v357_v41, 1  ;;  %v372_v49 = vadd.f32 %v1437_v43, %v1929_v1  ;;  %1519 = vmatpush3.msra.mxu0 %v1067_v17  ;;  %v1055_v39 = vld [vmem:[#allocation8 + $0x18] sm:$0xff]  ;;  %v1054_v41 = vld [vmem:[#allocation8 + $0x10] sm:$0xff]  ;;  %v1053_v43 = vld [vmem:[#allocation8 + $0x8] sm:$0xff] }
 0x150   :  { %v1605_v51 = vpop.eup %1604  ;;  %1618 = vtanh.f32 %v362_v36  ;;  %v366_v53 = vpop.f32.mrf.mxu0  ;;  %1520 = vmatprep.subr.mxu0 %v1066_v18  ;;  %v1057_v36 = vld [vmem:[#allocation8 + $0x28] sm:$0xff] }
 0x151   :  { %v1607_v54 = vpop.eup %1606  ;;  %v438_v55 = vrot.slane %v372_v49, 1  ;;  %v367_v56 = vadd.f32 %v1929_v1, %v366_v53  ;;  %1503 = vmatprep.mubr.f32.mxu1 %v1605_v51  ;;  %v2082_v59 = vsel %vm441_vm0, %v434_v34, %v435_v46  ;;  %v2086_v62 = vsel %vm441_vm0, %v435_v46, %v436_v52  ;;  %1521 = vmatpush3.msra.mxu0 %v1066_v18  ;;  %v1058_v34 = vld [vmem:[#allocation8 + $0x30] sm:$0xff]  ;;  %v1052_v46 = vld [vmem:[#allocation8] sm:$0xff] }
 0x152   :  { %1504 = vmatmul.mubr.f32.gmra.mxu1 %v1607_v54  ;;  %1522 = vmatprep.subr.mxu0 %v1065_v3 }
 0x153   :  { %1620 = vtanh.f32 %v367_v56  ;;  %v437_v63 = vrot.slane %v367_v56, 1  ;;  %v2092_v0 = vsel %vm441_vm0, %v438_v55, %v407_v9  ;;  %1523 = vmatpush3.msra.mxu0 %v1065_v3 }
 0x154   :  { %v1609_v2 = vpop.eup %1608  ;;  %1622 = vtanh.f32 %v372_v49  ;;  %1524 = vmatprep.subr.mxu0 %v1064_v21 }
 0x155   :  { %v1611_v1 = vpop.eup %1610  ;;  %1506 = vmatprep.mubr.f32.mxu1 %v1609_v2  ;;  %v2096_v4 = vsel %vm441_vm0, %v436_v52, %v437_v63  ;;  %v2100_v5 = vsel %vm441_vm0, %v437_v63, %v438_v55  ;;  %1525 = vmatpush3.msra.mxu0 %v1064_v21 }
 0x156   :  { %1507 = vmatmul.mubr.f32.gmra.mxu1 %v1611_v1  ;;  %1526 = vmatprep.subr.mxu0 %v1063_v24 }
 0x157   :  { %1527 = vmatpush3.msra.mxu0 %v1063_v24 }
 0x158   :  { %v1613_v8 = vpop.eup %1612  ;;  %1528 = vmatprep.subr.mxu0 %v1062_v25 }
 0x159   :  { %v1615_v12 = vpop.eup %1614  ;;  %1509 = vmatprep.mubr.f32.mxu1 %v1613_v8  ;;  %1529 = vmatpush3.msra.mxu0 %v1062_v25 }
 0x15a   :  { %1510 = vmatmul.mubr.f32.gmra.mxu1 %v1615_v12  ;;  %1530 = vmatprep.subr.mxu0 %v1061_v27 }
 0x15b   :  { %1531 = vmatpush3.msra.mxu0 %v1061_v27 }
 0x15c   :  { %v1617_v6 = vpop.eup %1616  ;;  %1532 = vmatprep.subr.mxu0 %v1060_v31 }
 0x15d   :  { %v1619_v9 = vpop.eup %1618  ;;  %1512 = vmatprep.mubr.f32.mxu1 %v1617_v6  ;;  %1533 = vmatpush3.msra.mxu0 %v1060_v31 }
 0x15e   :  { %1513 = vmatmul.mubr.f32.gmra.mxu1 %v1619_v9  ;;  %1534 = vmatprep.subr.mxu0 %v1059_v32 }
 0x15f   :  { %1535 = vmatpush3.msra.mxu0 %v1059_v32 }
 0x160   :  { %v1621_v15 = vpop.eup %1620  ;;  %1536 = vmatprep.subr.mxu0 %v1058_v34 }
 0x161   :  { %v1623_v16 = vpop.eup %1622  ;;  %1515 = vmatprep.mubr.f32.mxu1 %v1621_v15  ;;  %1537 = vmatpush3.msra.mxu0 %v1058_v34 }
 0x162   :  { %1516 = vmatmul.mubr.f32.gmra.mxu1 %v1623_v16  ;;  %1538 = vmatprep.subr.mxu0 %v1057_v36 }
 0x163   :  { %1539 = vmatpush3.msra.mxu0 %v1057_v36 }
 0x164   :  { %1540 = vmatprep.subr.mxu0 %v1056_v37 }
 0x165   :  { %1541 = vmatpush3.msra.mxu0 %v1056_v37 }
 0x166   :  { %1542 = vmatprep.subr.mxu0 %v1055_v39 }
 0x167   :  { %1543 = vmatpush3.msra.mxu0 %v1055_v39 }
 0x168   :  { %1544 = vmatprep.subr.mxu0 %v1054_v41 }
 0x169   :  { %1545 = vmatpush3.msra.mxu0 %v1054_v41 }
 0x16a   :  { %1546 = vmatprep.subr.mxu0 %v1053_v43 }
 0x16b   :  { %1547 = vmatpush3.msra.mxu0 %v1053_v43 }
 0x16c   :  { %1548 = vmatprep.subr.mxu0 %v1052_v46 }
 0x16d   :  { %1549 = vmatpush3.msra.mxu0 %v1052_v46 }
 0x1e6   :  { %v1472_v49 = vpop.f32.mrf.mxu1 }
 0x1e7   :  { %v700_v51 = vadd.f32 %v1472_v49, %v1952_v20 }
 0x1e8   :  { %v540_v52 = vpop.f32.mrf.mxu1 }
 0x1e9   :  { %1624 = vtanh.f32 %v700_v51  ;;  %v699_v53 = vadd.f32 %v540_v52, %v1946_v13 }
 0x1ea   :  { %v1475_v54 = vpop.f32.mrf.mxu1 }
 0x1eb   :  { %1626 = vtanh.f32 %v699_v53  ;;  %v702_v55 = vadd.f32 %v1475_v54, %v1962_v28 }
 0x1ec   :  { %v550_v56 = vpop.f32.mrf.mxu1 }
 0x1ed   :  { %1628 = vtanh.f32 %v702_v55  ;;  %v701_v63 = vadd.f32 %v550_v56, %v1956_v22 }
 0x1ee   :  { %v1478_v2 = vpop.f32.mrf.mxu1 }
 0x1ef   :  { %1630 = vtanh.f32 %v701_v63  ;;  %v704_v1 = vadd.f32 %v1478_v2, %v1972_v38 }
 0x1f0   :  { %v560_v8 = vpop.f32.mrf.mxu1 }
 0x1f1   :  { %1632 = vtanh.f32 %v704_v1  ;;  %v703_v20 = vadd.f32 %v560_v8, %v1966_v30 }
 0x1f2   :  { %v1481_v12 = vpop.f32.mrf.mxu1 }
 0x1f3   :  { %1634 = vtanh.f32 %v703_v20  ;;  %v706_v13 = vadd.f32 %v1481_v12, %v1982_v48 }
 0x1f4   :  { %v570_v6 = vpop.f32.mrf.mxu1 }
 0x1f5   :  { %1636 = vtanh.f32 %v706_v13  ;;  %v705_v28 = vadd.f32 %v570_v6, %v1976_v40 }
 0x1f6   :  { %v2110_v9 = vpop.eup %1624  ;;  %v1484_v15 = vpop.f32.mrf.mxu1 }
 0x1f7   :  { %v797_v22 = vmul.f32 1.442695, %v2110_v9  ;;  %1638 = vtanh.f32 %v705_v28  ;;  %v708_v38 = vadd.f32 %v1484_v15, %v1992_v58  ;;  %vm764_vm2 = vcmp.gt.f32.partialorder %v2110_v9, 0.0 }
 0x1f8   :  { %v2114_v16 = vpop.eup %1626  ;;  %v580_v17 = vpop.f32.mrf.mxu1 }
 0x1f9   :  { %1640 = vpow2.f32 %v797_v22  ;;  %v795_v30 = vmul.f32 1.442695, %v2114_v16  ;;  %v707_v48 = vadd.f32 %v580_v17, %v1986_v50  ;;  %vm763_vm3 = vcmp.gt.f32.partialorder %v2114_v16, 0.0 }
 0x1fa   :  { %v2118_v18 = vpop.eup %1628  ;;  %1642 = vtanh.f32 %v708_v38  ;;  %v1487_v40 = vpop.f32.mrf.mxu1 }
 0x1fb   :  { %1644 = vpow2.f32 %v795_v30  ;;  %v801_v3 = vmul.f32 1.442695, %v2118_v18  ;;  %v710_v21 = vadd.f32 %v1487_v40, %v2002_v7  ;;  %vm766_vm5 = vcmp.gt.f32.partialorder %v2118_v18, 0.0 }
 0x1fc   :  { %v2122_v24 = vpop.eup %1630  ;;  %1646 = vtanh.f32 %v707_v48  ;;  %v590_v58 = vpop.f32.mrf.mxu1 }
 0x1fd   :  { %1648 = vpow2.f32 %v801_v3  ;;  %v799_v25 = vmul.f32 1.442695, %v2122_v24  ;;  %v709_v27 = vadd.f32 %v590_v58, %v1996_v60  ;;  %vm765_vm4 = vcmp.gt.f32.partialorder %v2122_v24, 0.0 }
 0x1fe   :  { %v2126_v31 = vpop.eup %1632  ;;  %1650 = vtanh.f32 %v710_v21  ;;  %v1490_v50 = vpop.f32.mrf.mxu1 }
 0x1ff   :  { %1652 = vpow2.f32 %v799_v25  ;;  %v805_v32 = vmul.f32 1.442695, %v2126_v31  ;;  %v712_v34 = vadd.f32 %v1490_v50, %v2012_v19  ;;  %vm768_vm6 = vcmp.gt.f32.partialorder %v2126_v31, 0.0 }
 0x200   :  { %v2130_v36 = vpop.eup %1634  ;;  %1654 = vtanh.f32 %v709_v27  ;;  %v600_v7 = vpop.f32.mrf.mxu1 }
 0x201   :  { %1656 = vpow2.f32 %v805_v32  ;;  %v803_v37 = vmul.f32 1.442695, %v2130_v36  ;;  %v711_v39 = vadd.f32 %v600_v7, %v2006_v10  ;;  %vm767_vm7 = vcmp.gt.f32.partialorder %v2130_v36, 0.0 }
 0x202   :  { %v2134_v41 = vpop.eup %1636  ;;  %1658 = vtanh.f32 %v712_v34  ;;  %v1493_v60 = vpop.f32.mrf.mxu1 }
 0x203   :  { %1660 = vtanh.f32 %v711_v39  ;;  %v714_v43 = vadd.f32 %v1493_v60, %v2022_v33  ;;  %v809_v46 = vmul.f32 1.442695, %v2134_v41  ;;  %vm770_vm8 = vcmp.gt.f32.partialorder %v2134_v41, 0.0 }
 0x204   :  { %v2138_v49 = vpop.eup %1638  ;;  %v610_v19 = vpop.f32.mrf.mxu1  ;;  %1662 = vpow2.f32 %v803_v37 }
 0x205   :  { %1664 = vtanh.f32 %v714_v43  ;;  %v713_v51 = vadd.f32 %v610_v19, %v2016_v23  ;;  %v807_v52 = vmul.f32 1.442695, %v2138_v49  ;;  %vm769_vm9 = vcmp.gt.f32.partialorder %v2138_v49, 0.0 }
 0x206   :  { %v1641_v53 = vpop.eup %1640  ;;  %v1496_v10 = vpop.f32.mrf.mxu1  ;;  %1666 = vpow2.f32 %v809_v46 }
 0x207   :  { %v2142_v54 = vpop.eup %1642  ;;  %1668 = vtanh.f32 %v713_v51  ;;  %v716_v55 = vadd.f32 %v1496_v10, %v2032_v45  ;;  %v1212_v33 = vadd.f32 -1.0, %v1641_v53 }
 0x208   :  { %v1645_v56 = vpop.eup %1644  ;;  %v620_v63 = vpop.f32.mrf.mxu1  ;;  %1670 = vpow2.f32 %v807_v52  ;;  %v813_v2 = vmul.f32 1.442695, %v2142_v54  ;;  %vm772_vm10 = vcmp.gt.f32.partialorder %v2142_v54, 0.0 }
 0x209   :  { %v2147_v23 = vpop.eup %1646  ;;  %1672 = vtanh.f32 %v716_v55  ;;  %v715_v1 = vadd.f32 %v620_v63, %v2026_v35  ;;  %v1211_v8 = vadd.f32 -1.0, %v1645_v56  ;;  %v892_v20 = vsel %vm764_vm2, %v2110_v9, %v1212_v33 }
 0x20a   :  { %v1649_v12 = vpop.eup %1648  ;;  %v1499_v13 = vpop.f32.mrf.mxu1  ;;  %v811_v45 = vmul.f32 1.442695, %v2147_v23  ;;  %1674 = vpow2.f32 %v813_v2  ;;  %v924_v6 = vsel %vm923_vm1, %v892_v20, 0.0  ;;  %vm771_vm11 = vcmp.gt.f32.partialorder %v2147_v23, 0.0 }
 0x20b   :  { %v2154_v28 = vpop.eup %1650  ;;  %1676 = vtanh.f32 %v715_v1  ;;  %v718_v15 = vadd.f32 %v1499_v13, %v2042_v57  ;;  %v891_v22 = vsel %vm763_vm3, %v2114_v16, %v1211_v8  ;;  %v1214_v60 = vadd.f32 -1.0, %v1649_v12 }
 0x20c   :  { %v1653_v35 = vpop.eup %1652  ;;  %v630_v38 = vpop.f32.mrf.mxu1  ;;  %1678 = vpow2.f32 %v811_v45  ;;  %v817_v9 = vmul.f32 1.442695, %v2154_v28  ;;  %v925_v17 = vadd.f32 %v924_v6, %v891_v22  ;;  %vm774_vm12 = vcmp.gt.f32.partialorder %v2154_v28, 0.0 }
 0x20d   :  { %v2159_v30 = vpop.eup %1654  ;;  %1680 = vtanh.f32 %v718_v15  ;;  %v717_v48 = vadd.f32 %v630_v38, %v2036_v47  ;;  %v1213_v39 = vadd.f32 -1.0, %v1653_v35  ;;  %v894_v8 = vsel %vm766_vm5, %v2118_v18, %v1214_v60 }
 0x20e   :  { %v1657_v40 = vpop.eup %1656  ;;  %v1502_v3 = vpop.f32.mrf.mxu1  ;;  %v815_v21 = vmul.f32 1.442695, %v2159_v30  ;;  %1682 = vpow2.f32 %v817_v9  ;;  %v926_v58 = vrot.slane %v925_v17, 4  ;;  %vm773_vm13 = vcmp.gt.f32.partialorder %v2159_v30, 0.0 }
 0x20f   :  { %v2163_v57 = vpop.eup %1658  ;;  %1684 = vtanh.f32 %v717_v48  ;;  %v720_v16 = vadd.f32 %v1502_v3, %v2052_v11  ;;  %v1216_v53 = vadd.f32 -1.0, %v1657_v40  ;;  %v893_v1 = vsel %vm765_vm4, %v2122_v24, %v1213_v39 }
 0x210   :  { %v2168_v25 = vpop.eup %1660  ;;  %v640_v27 = vpop.f32.mrf.mxu1  ;;  %1686 = vpow2.f32 %v815_v21  ;;  %v821_v47 = vmul.f32 1.442695, %v2163_v57  ;;  %v927_v50 = vadd.f32 %v926_v58, %v925_v17  ;;  %vm776_vm14 = vcmp.gt.f32.partialorder %v2163_v57, 0.0 }
 0x211   :  { %v1663_v32 = vpop.eup %1662  ;;  %1688 = vtanh.f32 %v720_v16  ;;  %v719_v34 = vadd.f32 %v640_v27, %v2046_v61  ;;  %v819_v11 = vmul.f32 1.442695, %v2168_v25  ;;  %v896_v24 = vsel %vm768_vm6, %v2126_v31, %v1216_v53 }
 0x212   :  { %v2175_v7 = vpop.eup %1664  ;;  %v1505_v37 = vpop.f32.mrf.mxu1  ;;  %1690 = vpow2.f32 %v821_v47  ;;  %v928_v43 = vrot.slane %v927_v50, 2  ;;  %v1215_v2 = vadd.f32 -1.0, %v1663_v32  ;;  %v932_v31 = vsel %vm923_vm1, %v894_v8, 0.0 }
 0x213   :  { %v1667_v46 = vpop.eup %1666  ;;  %1692 = vtanh.f32 %v719_v34  ;;  %v722_v19 = vadd.f32 %v1505_v37, %v2062_v26  ;;  %v825_v61 = vmul.f32 1.442695, %v2175_v7  ;;  %vm775_vm15 = vcmp.gt.f32.partialorder %v2168_v25, 0.0 }
 0x214   :  { %v2181_v51 = vpop.eup %1668  ;;  %v650_v52 = vpop.f32.mrf.mxu1  ;;  %1694 = vpow2.f32 %v819_v11  ;;  %v929_v10 = vadd.f32 %v928_v43, %v927_v50  ;;  %v1218_v13 = vadd.f32 -1.0, %v1667_v46  ;;  %v895_v40 = vsel %vm767_vm7, %v2130_v36, %v1215_v2 }
 0x215   :  { %v1671_v55 = vpop.eup %1670  ;;  %1696 = vtanh.f32 %v722_v19  ;;  %v721_v33 = vadd.f32 %v650_v52, %v2056_v14  ;;  %v823_v26 = vmul.f32 1.442695, %v2181_v51  ;;  %vm778_vm0 = vcmp.gt.f32.partialorder %v2175_v7, 0.0 }
 0x216   :  { %v2187_v56 = vpop.eup %1672  ;;  %v1508_v63 = vpop.f32.mrf.mxu1  ;;  %1698 = vpow2.f32 %v825_v61  ;;  %v1217_v15 = vadd.f32 -1.0, %v1671_v55  ;;  %v930_v22 = vrot.slane %v929_v10, 1  ;;  %v2217_v58 = vsel %vm770_vm8, %v2134_v41, %v1218_v13 }
 0x217   :  { %v1675_v20 = vpop.eup %1674  ;;  %v829_v14 = vmul.f32 1.442695, %v2187_v56  ;;  %1700 = vtanh.f32 %v721_v33  ;;  %v724_v12 = vadd.f32 %v1508_v63, %v2072_v42  ;;  %vm777_vm2 = vcmp.gt.f32.partialorder %v2181_v51, 0.0 }
 0x218   :  { %v2197_v45 = vpop.eup %1676  ;;  %v660_v6 = vpop.f32.mrf.mxu1  ;;  %1702 = vpow2.f32 %v823_v26  ;;  %v1220_v42 = vadd.f32 -1.0, %v1675_v20  ;;  %v2225_v36 = vsel %vm769_vm9, %v2138_v49, %v1217_v15  ;;  %v2227_v47 = vadd.f32 %v930_v22, %v929_v10 }
 0x219   :  { %v1679_v35 = vpop.eup %1678  ;;  %1704 = vpow2.f32 %v829_v14  ;;  %v827_v18 = vmul.f32 1.442695, %v2197_v45  ;;  %v723_v38 = vadd.f32 %v660_v6, %v2066_v29  ;;  %vm1091_vm3 = vcmask 1041409  }
 0x21a   :  { %v2205_v9 = vpop.eup %1680  ;;  %1706 = vtanh.f32 %v724_v12  ;;  %v1511_v17 = vpop.f32.mrf.mxu1  ;;  %v1219_v48 = vadd.f32 -1.0, %v1679_v35  ;;  %v900_v34 = vsel %vm772_vm10, %v2142_v54, %v1220_v42  ;;  %v940_v54 = vsel %vm923_vm1, %v896_v24, 0.0 }
 0x21b   :  { %v1683_v3 = vpop.eup %1682  ;;  %1708 = vpow2.f32 %v827_v18  ;;  %v833_v21 = vmul.f32 1.442695, %v2205_v9  ;;  %v726_v29 = vadd.f32 %v1511_v17, %v2082_v59  ;;  %v933_v59 = vadd.f32 %v932_v31, %v893_v1 }
 0x21c   :  { %v2219_v16 = vpop.eup %1684  ;;  %1710 = vtanh.f32 %v723_v38  ;;  %v670_v27 = vpop.f32.mrf.mxu1  ;;  %v1222_v37 = vadd.f32 -1.0, %v1683_v3  ;;  %v899_v39 = vsel %vm771_vm11, %v2147_v23, %v1219_v48  ;;  %v941_v26 = vadd.f32 %v940_v54, %v895_v40 }
 0x21d   :  { %v1687_v50 = vpop.eup %1686  ;;  %1712 = vpow2.f32 %v833_v21  ;;  %v831_v32 = vmul.f32 1.442695, %v2219_v16  ;;  %v725_v41 = vadd.f32 %v670_v27, %v2076_v44  ;;  %v934_v60 = vrot.slane %v933_v59, 4 }
 0x21e   :  { %v2235_v11 = vpop.eup %1688  ;;  %1714 = vtanh.f32 %v726_v29  ;;  %v1514_v49 = vpop.f32.mrf.mxu1  ;;  %v1221_v52 = vadd.f32 -1.0, %v1687_v50  ;;  %v902_v1 = vsel %vm774_vm12, %v2154_v28, %v1222_v37  ;;  %v942_v13 = vrot.slane %v941_v26, 4 }
 0x21f   :  { %v1691_v43 = vpop.eup %1690  ;;  %1716 = vpow2.f32 %v831_v32  ;;  %v837_v44 = vmul.f32 1.442695, %v2235_v11  ;;  %v728_v46 = vadd.f32 %v1514_v49, %v2096_v4  ;;  %v935_v10 = vadd.f32 %v934_v60, %v933_v59 }
 0x220   :  { %v2245_v19 = vpop.eup %1692  ;;  %1718 = vtanh.f32 %v725_v41  ;;  %v680_v61 = vpop.f32.mrf.mxu1  ;;  %v1224_v53 = vadd.f32 -1.0, %v1691_v43  ;;  %v901_v24 = vsel %vm773_vm13, %v2159_v30, %v1221_v52  ;;  %v956_v31 = vsel %vm923_vm1, %v900_v34, 0.0 }
 0x221   :  { %v1695_v23 = vpop.eup %1694  ;;  %1720 = vpow2.f32 %v837_v44  ;;  %v835_v55 = vmul.f32 1.442695, %v2245_v19  ;;  %v727_v33 = vadd.f32 %v680_v61, %v2086_v62  ;;  %v936_v8 = vrot.slane %v935_v10, 2 }
 0x222   :  { %v2249_v4 = vpop.eup %1696  ;;  %1722 = vtanh.f32 %v728_v46  ;;  %v1517_v63 = vpop.f32.mrf.mxu1  ;;  %v1223_v2 = vadd.f32 -1.0, %v1695_v23  ;;  %v904_v18 = vsel %vm776_vm14, %v2163_v57, %v1224_v53  ;;  %v948_v57 = vsel %vm923_vm1, %v2217_v58, 0.0 }
 0x223   :  { %v1699_v20 = vpop.eup %1698  ;;  %1724 = vpow2.f32 %v835_v55  ;;  %v841_v14 = vmul.f32 1.442695, %v2249_v4  ;;  %v730_v12 = vadd.f32 %v1517_v63, %v2092_v0  ;;  %v937_v22 = vadd.f32 %v936_v8, %v935_v10 }
 0x224   :  { %v2256_v6 = vpop.eup %1700  ;;  %1726 = vtanh.f32 %v727_v33  ;;  %v690_v62 = vpop.f32.mrf.mxu1  ;;  %v1226_v15 = vadd.f32 -1.0, %v1699_v20  ;;  %v943_v0 = vadd.f32 %v942_v13, %v941_v26  ;;  %v903_v17 = vsel %vm775_vm15, %v2168_v25, %v1223_v2 }
 0x225   :  { %v1703_v35 = vpop.eup %1702  ;;  %1728 = vpow2.f32 %v841_v14  ;;  %v729_v28 = vadd.f32 %v690_v62, %v2100_v5  ;;  %v938_v48 = vrot.slane %v937_v22, 1  ;;  %v839_v21 = vmul.f32 1.442695, %v2256_v6 }
 0x226   :  { %v2265_v38 = vpop.eup %1704  ;;  %1730 = vtanh.f32 %v730_v12  ;;  %v1225_v42 = vadd.f32 -1.0, %v1703_v35  ;;  %v906_v5 = vsel %vm778_vm0, %v2175_v7, %v1226_v15  ;;  %v944_v40 = vrot.slane %v943_v0, 2 }
 0x227   :  { %v2270_v30 = vpop.eup %1706  ;;  %1732 = vtanh.f32 %v729_v28  ;;  %v939_v29 = vadd.f32 %v938_v48, %v937_v22  ;;  %v949_v7 = vadd.f32 %v948_v57, %v2225_v36  ;;  %v957_v50 = vadd.f32 %v956_v31, %v899_v39 }
 0x228   :  { %v2278_v3 = vpop.eup %1708  ;;  %v905_v25 = vsel %vm777_vm2, %v2181_v51, %v1225_v42  ;;  %v945_v59 = vadd.f32 %v944_v40, %v943_v0  ;;  %v964_v58 = vsel %vm923_vm1, %v902_v1, 0.0  ;;  %v972_v34 = vsel %vm923_vm1, %v904_v18, 0.0 }
 0x229   :  { %v2284_v27 = vpop.eup %1710  ;;  %v965_v41 = vadd.f32 %v964_v58, %v901_v24  ;;  %v980_v49 = vsel %vm923_vm1, %v906_v5, 0.0  ;;  %v1092_v37 = vsel %vm1091_vm3, %v939_v29, %v2227_v47  ;;  %v950_v43 = vrot.slane %v949_v7, 4 }
 0x22a   :  { %v2288_v32 = vpop.eup %1712  ;;  %v946_v60 = vrot.slane %v945_v59, 1  ;;  %v958_v44 = vrot.slane %v957_v50, 4  ;;  %v973_v46 = vadd.f32 %v972_v34, %v903_v17  ;;  %1734 = vpow2.f32 %v839_v21 }
 0x22b   :  { %v2294_v51 = vpop.eup %1714  ;;  %v966_v39 = vrot.slane %v965_v41, 4  ;;  %v981_v54 = vadd.f32 %v980_v49, %v905_v25  ;;  %vm1093_vm4 = vcmask 1042434   ;;  %v951_v53 = vadd.f32 %v950_v43, %v949_v7 }
 0x22c   :  { %v2296_v36 = vpop.eup %1716  ;;  %v947_v52 = vadd.f32 %v946_v60, %v945_v59  ;;  %v959_v10 = vadd.f32 %v958_v44, %v957_v50  ;;  %v974_v23 = vrot.slane %v973_v46, 4  ;;  %vm1095_vm5 = vcmask 1043459  }
 0x22d   :  { %v2298_v61 = vpop.eup %1718  ;;  %v967_v47 = vadd.f32 %v966_v39, %v965_v41  ;;  %v982_v33 = vrot.slane %v981_v54, 4  ;;  %v952_v63 = vrot.slane %v951_v53, 2  ;;  %vm1097_vm6 = vcmask 1044484  }
 0x22e   :  { %v2300_v55 = vpop.eup %1720  ;;  %v960_v2 = vrot.slane %v959_v10, 2  ;;  %v975_v1 = vadd.f32 %v974_v23, %v973_v46  ;;  %v1094_v8 = vsel %vm1093_vm4, %v947_v52, %v1092_v37  ;;  %v845_v62 = vmul.f32 1.442695, %v2270_v30 }
 0x22f   :  { %v2302_v26 = vpop.eup %1722  ;;  %v968_v14 = vrot.slane %v967_v47, 2  ;;  %v983_v12 = vadd.f32 %v982_v33, %v981_v54  ;;  %v953_v15 = vadd.f32 %v952_v63, %v951_v53  ;;  %vm1099_vm7 = vcmask 1045509  }
 0x230   :  { %v1725_v20 = vpop.eup %1724  ;;  %v961_v24 = vadd.f32 %v960_v2, %v959_v10  ;;  %v976_v22 = vrot.slane %v975_v1, 2  ;;  %vm1101_vm8 = vcmask 1046534   ;;  %vm1103_vm9 = vcmask 1047559  }
 0x231   :  { %v2305_v13 = vpop.eup %1726  ;;  %v969_v28 = vadd.f32 %v968_v14, %v967_v47  ;;  %v984_v18 = vrot.slane %v983_v12, 2  ;;  %v954_v42 = vrot.slane %v953_v15, 1  ;;  %vm780_vm10 = vcmp.gt.f32.partialorder %v2187_v56, 0.0 }
 0x232   :  { %v1729_v35 = vpop.eup %1728  ;;  %v962_v17 = vrot.slane %v961_v24, 1  ;;  %v977_v48 = vadd.f32 %v976_v22, %v975_v1  ;;  %vm779_vm11 = vcmp.gt.f32.partialorder %v2197_v45, 0.0  ;;  %v843_v57 = vmul.f32 1.442695, %v2284_v27 }
 0x233   :  { %v2308_v0 = vpop.eup %1730  ;;  %v970_v5 = vrot.slane %v969_v28, 1  ;;  %v985_v40 = vadd.f32 %v984_v18, %v983_v12  ;;  %vm782_vm12 = vcmp.gt.f32.partialorder %v2205_v9, 0.0  ;;  %vm781_vm13 = vcmp.gt.f32.partialorder %v2219_v16, 0.0 }
 0x234   :  { %v2313_v31 = vpop.eup %1732  ;;  %v955_v21 = vadd.f32 %v954_v42, %v953_v15  ;;  %v963_v25 = vadd.f32 %v962_v17, %v961_v24  ;;  %v978_v29 = vrot.slane %v977_v48, 1  ;;  %vm783_vm14 = vcmp.gt.f32.partialorder %v2245_v19, 0.0 }
 0x235   :  { %1736 = vpow2.f32 %v845_v62  ;;  %v971_v59 = vadd.f32 %v970_v5, %v969_v28  ;;  %v986_v7 = vrot.slane %v985_v40, 1  ;;  %vm784_vm15 = vcmp.gt.f32.partialorder %v2235_v11, 0.0 }
 0x236   :  { %vm785_vm0 = vcmp.gt.f32.partialorder %v2256_v6, 0.0  ;;  %vm786_vm2 = vcmp.gt.f32.partialorder %v2249_v4, 0.0  ;;  %1738 = vpow2.f32 %v843_v57  ;;  %v979_v50 = vadd.f32 %v978_v29, %v977_v48 }
 0x237   :  { %v1096_v58 = vsel %vm1095_vm5, %v955_v21, %v1094_v8  ;;  %v847_v41 = vmul.f32 1.442695, %v2298_v61  ;;  %v849_v34 = vmul.f32 1.442695, %v2294_v51  ;;  %v987_v49 = vadd.f32 %v986_v7, %v985_v40  ;;  %v1735_v44 = vpop.eup %1734 }
 0x238   :  { %v1098_v37 = vsel %vm1097_vm6, %v963_v25, %v1096_v58  ;;  %v851_v60 = vmul.f32 1.442695, %v2305_v13  ;;  %v853_v43 = vmul.f32 1.442695, %v2302_v26  ;;  %v855_v39 = vmul.f32 1.442695, %v2313_v31 }
 0x239   :  { %v1100_v46 = vsel %vm1099_vm7, %v971_v59, %v1098_v37  ;;  %1740 = vpow2.f32 %v847_v41  ;;  %v857_v54 = vmul.f32 1.442695, %v2308_v0  ;;  %v1227_v53 = vadd.f32 -1.0, %v2278_v3 }
 0x23a   :  { %v1102_v52 = vsel %vm1101_vm8, %v979_v50, %v1100_v46  ;;  %1742 = vpow2.f32 %v849_v34  ;;  %v1228_v10 = vadd.f32 -1.0, %v2265_v38  ;;  %v1229_v47 = vadd.f32 -1.0, %v2296_v36 }
 0x23b   :  { %v1104_v23 = vsel %vm1103_vm9, %v987_v49, %v1102_v52  ;;  %1744 = vpow2.f32 %v851_v60  ;;  %v1230_v33 = vadd.f32 -1.0, %v2288_v32  ;;  %v1231_v63 = vadd.f32 -1.0, %v1725_v20 }
 0x23c   :  { %1550 = vmatprep.mubr.f32.mxu0 %v1104_v23  ;;  %1746 = vpow2.f32 %v853_v43  ;;  %v1232_v2 = vadd.f32 -1.0, %v2300_v55  ;;  %v1233_v1 = vadd.f32 -1.0, %v1735_v44  ;;  %v1234_v8 = vadd.f32 -1.0, %v1729_v35 }
 0x23d   :  { %1748 = vpow2.f32 %v855_v39  ;;  %v907_v3 = vsel %vm779_vm11, %v2197_v45, %v1227_v53  ;;  %v908_v38 = vsel %vm780_vm10, %v2187_v56, %v1228_v10  ;;  %v909_v32 = vsel %vm781_vm13, %v2219_v16, %v1229_v47 }
 0x23e   :  { %1750 = vpow2.f32 %v857_v54  ;;  %v910_v36 = vsel %vm782_vm12, %v2205_v9, %v1230_v33  ;;  %v911_v55 = vsel %vm783_vm14, %v2245_v19, %v1231_v63  ;;  %v912_v45 = vsel %vm784_vm15, %v2235_v11, %v1232_v2 }
 0x23f   :  { %v913_v56 = vsel %vm785_vm0, %v2256_v6, %v1233_v1  ;;  %v914_v16 = vsel %vm786_vm2, %v2249_v4, %v1234_v8  ;;  %v988_v20 = vsel %vm923_vm1, %v908_v38, 0.0  ;;  %v996_v9 = vsel %vm923_vm1, %v910_v36, 0.0 }
 0x240   :  { %v989_v14 = vadd.f32 %v988_v20, %v907_v3  ;;  %v1004_v12 = vsel %vm923_vm1, %v912_v45, 0.0  ;;  %v1012_v19 = vsel %vm923_vm1, %v914_v16, 0.0  ;;  %vm787_vm10 = vcmp.gt.f32.partialorder %v2284_v27, 0.0 }
 0x241   :  { %v997_v11 = vadd.f32 %v996_v9, %v909_v32  ;;  %v1005_v62 = vadd.f32 %v1004_v12, %v911_v55  ;;  %v1013_v15 = vadd.f32 %v1012_v19, %v913_v56  ;;  %vm788_vm11 = vcmp.gt.f32.partialorder %v2270_v30, 0.0 }
 0x242   :  { %v1737_v24 = vpop.eup %1736  ;;  %vm789_vm12 = vcmp.gt.f32.partialorder %v2298_v61, 0.0  ;;  %vm790_vm13 = vcmp.gt.f32.partialorder %v2294_v51, 0.0  ;;  %v990_v4 = vrot.slane %v989_v14, 4  ;;  %vm791_vm14 = vcmp.gt.f32.partialorder %v2305_v13, 0.0 }
 0x243   :  { %v1739_v6 = vpop.eup %1738  ;;  %v1236_v22 = vadd.f32 -1.0, %v1737_v24  ;;  %v998_v35 = vrot.slane %v997_v11, 4  ;;  %v1006_v28 = vrot.slane %v1005_v62, 4  ;;  %v1014_v18 = vrot.slane %v1013_v15, 4 }
 0x244   :  { %vm792_vm15 = vcmp.gt.f32.partialorder %v2302_v26, 0.0  ;;  %v1235_v42 = vadd.f32 -1.0, %v1739_v6  ;;  %v991_v17 = vadd.f32 %v990_v4, %v989_v14  ;;  %vm794_vm0 = vcmp.gt.f32.partialorder %v2308_v0, 0.0 }
 0x245   :  { %v916_v48 = vsel %vm788_vm11, %v2270_v30, %v1236_v22  ;;  %v999_v5 = vadd.f32 %v998_v35, %v997_v11  ;;  %v1007_v40 = vadd.f32 %v1006_v28, %v1005_v62  ;;  %v1015_v57 = vadd.f32 %v1014_v18, %v1013_v15 }
 0x246   :  { %v1741_v21 = vpop.eup %1740  ;;  %v915_v25 = vsel %vm787_vm10, %v2284_v27, %v1235_v42  ;;  %v992_v29 = vrot.slane %v991_v17, 2  ;;  %v1020_v59 = vsel %vm923_vm1, %v916_v48, 0.0  ;;  %vm793_vm2 = vcmp.gt.f32.partialorder %v2313_v31, 0.0 }
 0x247   :  { %v1743_v7 = vpop.eup %1742  ;;  %v1237_v50 = vadd.f32 -1.0, %v1741_v21  ;;  %v1000_v58 = vrot.slane %v999_v5, 2  ;;  %v1008_v41 = vrot.slane %v1007_v40, 2  ;;  %v1016_v34 = vrot.slane %v1015_v57, 2 }
 0x248   :  { %v1745_v49 = vpop.eup %1744  ;;  %v1238_v30 = vadd.f32 -1.0, %v1743_v7  ;;  %v993_v37 = vadd.f32 %v992_v29, %v991_v17  ;;  %v1021_v60 = vadd.f32 %v1020_v59, %v915_v25 }
 0x249   :  { %v1747_v43 = vpop.eup %1746  ;;  %v1239_v44 = vadd.f32 -1.0, %v1745_v49  ;;  %v917_v27 = vsel %vm789_vm12, %v2298_v61, %v1237_v50  ;;  %v1001_v46 = vadd.f32 %v1000_v58, %v999_v5  ;;  %v1009_v39 = vadd.f32 %v1008_v41, %v1007_v40 }
 0x24a   :  { %v1749_v54 = vpop.eup %1748  ;;  %v1240_v52 = vadd.f32 -1.0, %v1747_v43  ;;  %v918_v53 = vsel %vm790_vm13, %v2294_v51, %v1238_v30  ;;  %v994_v10 = vrot.slane %v993_v37, 1  ;;  %v1017_v23 = vadd.f32 %v1016_v34, %v1015_v57  ;;  %v1243_v30 = vld [vmem:[%s2420_s5] ss:$0 sm:$0xff] }
 0x24b   :  { %v1751_v47 = vpop.eup %1750  ;;  %v1241_v33 = vadd.f32 -1.0, %v1749_v54  ;;  %v919_v63 = vsel %vm791_vm14, %v2305_v13, %v1239_v44  ;;  %v1002_v2 = vrot.slane %v1001_v46, 1  ;;  %v1010_v1 = vrot.slane %v1009_v39, 1 }
 0x24c   :  { %v1242_v8 = vadd.f32 -1.0, %v1751_v47  ;;  %v920_v61 = vsel %vm792_vm15, %v2302_v26, %v1240_v52  ;;  %v995_v3 = vadd.f32 %v994_v10, %v993_v37  ;;  %v1018_v38 = vrot.slane %v1017_v23, 1 }
 0x24d   :  { %v921_v51 = vsel %vm793_vm2, %v2313_v31, %v1241_v33  ;;  %v1003_v32 = vadd.f32 %v1002_v2, %v1001_v46  ;;  %v1011_v36 = vadd.f32 %v1010_v1, %v1009_v39  ;;  %v1022_v55 = vrot.slane %v1021_v60, 4 }
 0x24e   :  { %v922_v13 = vsel %vm794_vm0, %v2308_v0, %v1242_v8  ;;  %v1019_v45 = vadd.f32 %v1018_v38, %v1017_v23  ;;  %v1028_v56 = vsel %vm923_vm1, %v918_v53, 0.0  ;;  %v1036_v16 = vsel %vm923_vm1, %v920_v61, 0.0 }
 0x24f   :  { %v1023_v20 = vadd.f32 %v1022_v55, %v1021_v60  ;;  %v1029_v26 = vadd.f32 %v1028_v56, %v917_v27  ;;  %v1037_v14 = vadd.f32 %v1036_v16, %v919_v63  ;;  %v1044_v9 = vsel %vm923_vm1, %v922_v13, 0.0 }
 0x250   :  { %v1045_v12 = vadd.f32 %v1044_v9, %v921_v51  ;;  %v1105_v31 = vsel %vm1091_vm3, %v1003_v32, %v995_v3 }
 0x251   :  { %v1024_v19 = vrot.slane %v1023_v20, 2  ;;  %v1030_v11 = vrot.slane %v1029_v26, 4  ;;  %v1038_v62 = vrot.slane %v1037_v14, 4  ;;  %v1106_v15 = vsel %vm1093_vm4, %v1011_v36, %v1105_v31 }
 0x252   :  { %v1046_v24 = vrot.slane %v1045_v12, 4  ;;  %v1107_v0 = vsel %vm1095_vm5, %v1019_v45, %v1106_v15 }
 0x253   :  { %v1025_v4 = vadd.f32 %v1024_v19, %v1023_v20  ;;  %v1031_v6 = vadd.f32 %v1030_v11, %v1029_v26  ;;  %v1039_v22 = vadd.f32 %v1038_v62, %v1037_v14 }
 0x254   :  { %v1047_v35 = vadd.f32 %v1046_v24, %v1045_v12 }
 0x255   :  { %v1026_v28 = vrot.slane %v1025_v4, 1  ;;  %v1032_v18 = vrot.slane %v1031_v6, 2  ;;  %v1040_v42 = vrot.slane %v1039_v22, 2 }
 0x256   :  { %v1048_v17 = vrot.slane %v1047_v35, 2 }
 0x257   :  { %v1027_v48 = vadd.f32 %v1026_v28, %v1025_v4  ;;  %v1033_v5 = vadd.f32 %v1032_v18, %v1031_v6  ;;  %v1041_v40 = vadd.f32 %v1040_v42, %v1039_v22 }
 0x258   :  { %v1049_v57 = vadd.f32 %v1048_v17, %v1047_v35 }
 0x259   :  { %v1034_v21 = vrot.slane %v1033_v5, 1  ;;  %v1042_v25 = vrot.slane %v1041_v40, 1  ;;  %v1108_v29 = vsel %vm1097_vm6, %v1027_v48, %v1107_v0 }
 0x25a   :  { %v1050_v59 = vrot.slane %v1049_v57, 1 }
 0x25b   :  { %v1035_v7 = vadd.f32 %v1034_v21, %v1033_v5  ;;  %v1043_v50 = vadd.f32 %v1042_v25, %v1041_v40 }
 0x25c   :  { %v1051_v58 = vadd.f32 %v1050_v59, %v1049_v57 }
 0x25d   :  { %v1109_v41 = vsel %vm1099_vm7, %v1035_v7, %v1108_v29 }
 0x25e   :  { %v1110_v34 = vsel %vm1101_vm8, %v1043_v50, %v1109_v41 }
 0x25f   :  { %v1111_v49 = vsel %vm1103_vm9, %v1051_v58, %v1110_v34 }
 0x260   :  { %1551 = vmatmul.mubr.f32.vlgmr.msra.gmra.mxu0 %v1111_v49 }
 0x320   :  { %v1552_v37 = vpop.f32.mrf.mxu0 }
 0x321   :  { %v1186_v60 = vadd.f32 %v1552_v37, %v1243_v30 }
 0x322   :  { %v1180_v43 = vpop.f32.mrf.mxu0 }
 0x323   :  { %1190 = vst [vmem:[#allocation10 + $0x8] sm:$0xff] %v1186_v60  ;;  %v1181_v44 = vadd.f32 %v1243_v30, %v1180_v43 }
 0x325   :  { %1189 = vst [vmem:[#allocation10] sm:$0xff] %v1181_v44 }
 0x326   :  { %1843 = shalt.err (!%p1840_p10)
}
 0x327   :  { %1202 = dma.vmem_to_hbm [thread:$0]  %s1197_s19, 256, %s2421_s6, [#allocation4], %s1862_s26, %s1862_s26, %s1863_s27  }
 0x328   :  { %1858 = dma.done.wait [#allocation4], 256  }
 0x329   :  { %1859 = vsyncadd [#allocation4], 4294967040 }
 0x32a   :  { %1206 = vsyncpa [#allocation3], 1 }
 0x32b   :  { %1207 = vsyncpa [#allocation6], 1 }
 0x32c   :  { %1208 = vsyncpa [#allocation9], 1 }
 0x32d   :  { %1209 = vsyncpa [#allocation4], 1 }

</bundles_post_ra>
